<compile_context>
chip_gen: v7x
topology: tpu7x:2x2x1
jax: 0.10.0
libtpu: 0.0.40
codegen_flags: <defaults>
</compile_context>

<pallas_src>
import jax
import jax.numpy as jnp
from jax.experimental import pallas as pl
from jax.experimental.pallas import tpu as pltpu


def _make_pass1_kernel(K, TILE_H, WoC):
    """Gated conv pass: banded matmuls + bias + ReLU*sigmoid gate + BN partial stats."""

    def kernel(band_ref, rw_ref, bias_ref, y_ref, stats_ref):
        # stats accumulator is a resident output block (constant index_map, axis "arbitrary")
        @pl.when(pl.program_id(0) == 0)
        def _init():
            stats_ref[...] = jnp.zeros_like(stats_ref)

        b = band_ref[0]                                   # (Hb, Wp*Cin) f32, lane-dense
        acc = jnp.zeros((TILE_H, 2 * WoC), jnp.float32)
        for kh in range(K):                               # K shifted matmuls, fused conv+mask RHS
            acc = acc + jnp.dot(b[kh:kh + TILE_H, :], rw_ref[kh],
                                preferred_element_type=jnp.float32)
        acc = acc + bias_ref[...]                         # (1, 2*WoC) broadcast

        conv = acc[:, :WoC]                               # lane slice at a multiple of 128
        m = acc[:, WoC:]
        gate = pl.reciprocal(1.0 + jnp.exp(-m), approx=False)   # sigmoid(g(I)); exp -> EUP
        y = jnp.maximum(conv, 0.0) * gate                 # ReLU(f(I)) * gate, (TILE_H, WoC)
        y_ref[...] = y                                    # lane-dense store

        # per-(w, channel) partial sums for training-mode BatchNorm2d
        s1 = jnp.sum(y, axis=0, keepdims=True)
        s2 = jnp.sum(y * y, axis=0, keepdims=True)
        stats_ref[...] = stats_ref[...] + jnp.concatenate([s1, s2], axis=0)

    return kernel


def _bn_apply_kernel(y_ref, scale_ref, shift_ref, out_ref):
    """Pass 2: lane-dense per-channel affine (gamma*(x-mean)*rsqrt(var+eps)+beta, pre-folded)."""
    out_ref[...] = y_ref[...] * scale_ref[...] + shift_ref[...]


def gated_deconv2d_with_activation(x_nchw, params, *, scale_factor=2, padding=1):
    """Forward of GatedDeConv2dWithActivation (stride=1, dilation=1, groups=1, training BN)."""
    wc, wm = params["w_conv"], params["w_mask"]           # (K, K, Cin, Cout)
    bc, bm = params["b_conv"], params["b_mask"]           # (Cout,)
    gamma, beta = params["gamma"], params["beta"]         # (Cout,)
    K, _, Cin, Cout = wc.shape
    N, C, H, W = x_nchw.shape
    assert C == Cin
    s = scale_factor

    # F.interpolate(scale_factor=s) default mode='nearest' == integer repeat.
    x = jnp.transpose(x_nchw, (0, 2, 3, 1))                              # NHWC
    x = jnp.repeat(jnp.repeat(x, s, axis=1), s, axis=2)
    x = jnp.pad(x, ((0, 0), (padding, padding), (padding, padding), (0, 0)))
    # TODO(synk): fold the nearest upsample + zero pad into the band gather / index math to
    # avoid materializing the upsampled tensor (extra HBM round-trip of wrapper glue).
    Hp, Wp = x.shape[1], x.shape[2]
    Ho, Wo = Hp - K + 1, Wp - K + 1                                      # stride 1
    WoC = Wo * Cout
    WpC = Wp * Cin

    TILE_H = next((t for t in (16, 8, 32) if Ho % t == 0), None)
    assert TILE_H is not None, "output height must be a multiple of 8"
    nb = Ho // TILE_H
    Hb = TILE_H + K - 1                                                  # halo rows
    NT = N * nb

    # Overlapping row-bands: the only activation traffic the kernel reads (no 9x im2col slab).
    row_idx = (jnp.arange(nb) * TILE_H)[:, None] + jnp.arange(Hb)[None, :]
    bands = x[:, row_idx].reshape(NT, Hb, WpC)                           # (NT, Hb, Wp*Cin)

    # Banded weights: fold the W-convolution (and the conv/mask fusion) into one lane-dense RHS
    # so each kh contributes a single (TILE_H, Wp*Cin) x (Wp*Cin, 2*Wo*Cout) matmul.
    # TODO(synk): for very large W this RHS scales with Wo; add a W-tiling level to bound it.
    def banded(w):
        pw = jnp.arange(Wp)
        wo = jnp.arange(Wo)
        kw = pw[:, None] - wo[None, :]                                   # (Wp, Wo)
        valid = (kw >= 0) & (kw < K)
        g = w[:, jnp.clip(kw, 0, K - 1)]                                 # (K, Wp, Wo, Cin, Cout)
        g = jnp.where(valid[None, :, :, None, None], g, 0.0)
        return jnp.transpose(g, (0, 1, 3, 2, 4)).reshape(K, WpC, WoC)

    rw = jnp.concatenate([banded(wc), banded(wm)], axis=-1)              # (K, WpC, 2*WoC)
    bias = jnp.concatenate([jnp.tile(bc, Wo), jnp.tile(bm, Wo)]).reshape(1, 2 * WoC)

    kernel1 = _make_pass1_kernel(K, TILE_H, WoC)
    y2d, stats = pl.pallas_call(
        kernel1,
        out_shape=(jax.ShapeDtypeStruct((NT * TILE_H, WoC), jnp.float32),
                   jax.ShapeDtypeStruct((2, WoC), jnp.float32)),
        grid=(NT,),
        in_specs=[pl.BlockSpec((1, Hb, WpC), lambda t: (t, 0, 0)),       # activation band
                  pl.BlockSpec((K, WpC, 2 * WoC), lambda t: (0, 0, 0)),  # resident fused weight
                  pl.BlockSpec((1, 2 * WoC), lambda t: (0, 0))],         # resident fused bias
        out_specs=(pl.BlockSpec((TILE_H, WoC), lambda t: (t, 0)),        # gated activation
                   pl.BlockSpec((2, WoC), lambda t: (0, 0))),            # stats accumulator
        compiler_params=pltpu.CompilerParams(
            dimension_semantics=("arbitrary",),                          # stats accumulate
            vmem_limit_bytes=32 * 1024 * 1024),
    )(bands, rw, bias)

    # BatchNorm2d, training mode: batch statistics (biased variance) folded into scale/shift.
    m_total = N * Ho * Wo
    ssum = stats[0].reshape(Wo, Cout).sum(axis=0)
    ssq = stats[1].reshape(Wo, Cout).sum(axis=0)
    mean = ssum / m_total
    var = jnp.maximum(ssq / m_total - mean * mean, 0.0)
    scale = gamma * jax.lax.rsqrt(var + 1e-5)
    shift = beta - mean * scale
    scale_t = jnp.tile(scale, Wo).reshape(1, WoC)
    shift_t = jnp.tile(shift, Wo).reshape(1, WoC)
    # TODO(synk): BatchNorm running_mean/running_var buffer updates (training side effect)
    # are not modeled; only the forward output is reproduced.

    rows = NT * TILE_H
    TILE_R = TILE_H
    out2d = pl.pallas_call(
        _bn_apply_kernel,
        out_shape=jax.ShapeDtypeStruct((rows, WoC), jnp.float32),
        grid=(rows // TILE_R,),
        in_specs=[pl.BlockSpec((TILE_R, WoC), lambda i: (i, 0)),
                  pl.BlockSpec((1, WoC), lambda i: (0, 0)),
                  pl.BlockSpec((1, WoC), lambda i: (0, 0))],
        out_specs=pl.BlockSpec((TILE_R, WoC), lambda i: (i, 0)),
        compiler_params=pltpu.CompilerParams(dimension_semantics=("parallel",)),
        input_output_aliases={0: 0},                                     # normalize in place
    )(y2d, scale_t, shift_t)

    out = out2d.reshape(N, Ho, Wo, Cout)
    return jnp.transpose(out, (0, 3, 1, 2))                              # back to NCHW


def _reference(x_nchw, params, *, scale_factor=2, padding=1):
    """Pure-JAX reference for correctness checking."""
    wc, wm = params["w_conv"], params["w_mask"]
    bc, bm = params["b_conv"], params["b_mask"]
    gamma, beta = params["gamma"], params["beta"]
    x = jnp.repeat(jnp.repeat(x_nchw, scale_factor, axis=2), scale_factor, axis=3)
    x = jnp.transpose(x, (0, 2, 3, 1))
    dn = ("NHWC", "HWIO", "NHWC")
    pad = [(padding, padding), (padding, padding)]
    conv = jax.lax.conv_general_dilated(x, wc, (1, 1), pad, dimension_numbers=dn) + bc
    mask = jax.lax.conv_general_dilated(x, wm, (1, 1), pad, dimension_numbers=dn) + bm
    y = jax.nn.relu(conv) * jax.nn.sigmoid(mask)
    mean = jnp.mean(y, axis=(0, 1, 2), keepdims=True)
    var = jnp.mean((y - mean) ** 2, axis=(0, 1, 2), keepdims=True)
    y = gamma * (y - mean) * jax.lax.rsqrt(var + 1e-5) + beta
    return jnp.transpose(y, (0, 3, 1, 2))


if __name__ == "__main__":
    key = jax.random.PRNGKey(0)
    kx, kwc, kwm, kbc, kbm = jax.random.split(key, 5)

    # Module config: GatedDeConv2dWithActivation(scale_factor=2, 4, 8, kernel_size=3,
    #                                            stride=1, padding=1)
    N, Cin, H, W = 2, 4, 16, 16
    Cout, K, scale_factor, padding = 8, 3, 2, 1

    x = jax.random.normal(kx, (N, Cin, H, W), jnp.float32)

    # Deterministic synthetic init (kaiming_normal_-style conv weights, BN defaults).
    fan_in = Cin * K * K
    w_std = (2.0 / fan_in) ** 0.5
    b_bound = 1.0 / (fan_in ** 0.5)
    params = dict(
        w_conv=w_std * jax.random.normal(kwc, (K, K, Cin, Cout), jnp.float32),
        w_mask=w_std * jax.random.normal(kwm, (K, K, Cin, Cout), jnp.float32),
        b_conv=jax.random.uniform(kbc, (Cout,), jnp.float32, -b_bound, b_bound),
        b_mask=jax.random.uniform(kbm, (Cout,), jnp.float32, -b_bound, b_bound),
        gamma=jnp.ones((Cout,), jnp.float32),
        beta=jnp.zeros((Cout,), jnp.float32),
    )

    fwd = jax.jit(lambda inp: gated_deconv2d_with_activation(
        inp, params, scale_factor=scale_factor, padding=padding))
    out = jax.block_until_ready(fwd(x))
    assert out.shape == (N, Cout, H * scale_factor, W * scale_factor), out.shape

    ref = _reference(x, params, scale_factor=scale_factor, padding=padding)
    max_err = float(jnp.max(jnp.abs(out - ref)))
    if max_err > 2e-3:
        raise AssertionError(f"Pallas kernel mismatch vs reference: max|err|={max_err}")

    print("KERNEL_OK")
</pallas_src>

<mosaic_0001>
module attributes {stable_mosaic.version = 11 : i64} {
  func.func @_bn_apply_kernel(%arg0: i32, %arg1: memref<16x256xf32, #tpu.memory_space<vmem>>, %arg2: memref<1x256xf32, #tpu.memory_space<vmem>>, %arg3: memref<1x256xf32, #tpu.memory_space<vmem>>, %arg4: memref<16x256xf32, #tpu.memory_space<vmem>>) attributes {dimension_semantics = [#tpu.dimension_semantics<parallel>], iteration_bounds = array<i64: 4>, scalar_prefetch = 0 : i64, scratch_operands = 0 : i64, tpu.core_type = #tpu.core_type<tc>, window_params = [{transform_indices = @transform_0, window_bounds = array<i64: 16, 256>}, {pipeline_mode = #tpu.pipeline_mode<synchronous>, transform_indices = @transform_1, window_bounds = array<i64: 1, 256>}, {pipeline_mode = #tpu.pipeline_mode<synchronous>, transform_indices = @transform_2, window_bounds = array<i64: 1, 256>}, {transform_indices = @transform_3, window_bounds = array<i64: 16, 256>}]} {
    %c0 = arith.constant 0 : index
    %c0_0 = arith.constant 0 : index
    %0 = vector.load %arg1[%c0, %c0_0] : memref<16x256xf32, #tpu.memory_space<vmem>>, vector<16x256xf32>
    %c0_1 = arith.constant 0 : index
    %c0_2 = arith.constant 0 : index
    %1 = vector.load %arg2[%c0_1, %c0_2] : memref<1x256xf32, #tpu.memory_space<vmem>>, vector<1x256xf32>
    %2 = vector.broadcast %1 : vector<1x256xf32> to vector<16x256xf32>
    %3 = arith.mulf %0, %2 : vector<16x256xf32>
    %c0_3 = arith.constant 0 : index
    %c0_4 = arith.constant 0 : index
    %4 = vector.load %arg3[%c0_3, %c0_4] : memref<1x256xf32, #tpu.memory_space<vmem>>, vector<1x256xf32>
    %5 = vector.broadcast %4 : vector<1x256xf32> to vector<16x256xf32>
    %6 = arith.addf %3, %5 : vector<16x256xf32>
    %c0_5 = arith.constant 0 : index
    %c0_6 = arith.constant 0 : index
    %7 = vector.load %arg4[%c0_5, %c0_6] : memref<16x256xf32, #tpu.memory_space<vmem>>, vector<16x256xf32>
    tpu.vector_store %arg4[%c0_5, %c0_6], %6 {strides = array<i32>} : memref<16x256xf32, #tpu.memory_space<vmem>>, vector<16x256xf32>,
    return
  }
  func.func @transform_0(%arg0: i32) -> (i32, i32) {
    %c0_i32 = arith.constant 0 : i32
    %c0_i32_0 = arith.constant 0 : i32
    return %arg0, %c0_i32 : i32, i32
  }
  func.func @transform_1(%arg0: i32) -> (i32, i32) {
    %c0_i32 = arith.constant 0 : i32
    %c0_i32_0 = arith.constant 0 : i32
    %c0_i32_1 = arith.constant 0 : i32
    return %c0_i32, %c0_i32_0 : i32, i32
  }
  func.func @transform_2(%arg0: i32) -> (i32, i32) {
    %c0_i32 = arith.constant 0 : i32
    %c0_i32_0 = arith.constant 0 : i32
    %c0_i32_1 = arith.constant 0 : i32
    return %c0_i32, %c0_i32_0 : i32, i32
  }
  func.func @transform_3(%arg0: i32) -> (i32, i32) {
    %c0_i32 = arith.constant 0 : i32
    %c0_i32_0 = arith.constant 0 : i32
    return %arg0, %c0_i32 : i32, i32
  }
}

module attributes {stable_mosaic.version = 11 : i64} {
  func.func @kernel(%arg0: i32, %arg1: memref<1x18x136xf32, #tpu.memory_space<vmem>>, %arg2: memref<3x136x512xf32, #tpu.memory_space<vmem>>, %arg3: memref<1x512xf32, #tpu.memory_space<vmem>>, %arg4: memref<16x256xf32, #tpu.memory_space<vmem>>, %arg5: memref<2x256xf32, #tpu.memory_space<vmem>>) attributes {dimension_semantics = [#tpu.dimension_semantics<arbitrary>], iteration_bounds = array<i64: 4>, scalar_prefetch = 0 : i64, scratch_operands = 0 : i64, tpu.core_type = #tpu.core_type<tc>, window_params = [{transform_indices = @transform_0, window_bounds = array<i64: 1, 18, 136>}, {pipeline_mode = #tpu.pipeline_mode<synchronous>, transform_indices = @transform_1, window_bounds = array<i64: 3, 136, 512>}, {pipeline_mode = #tpu.pipeline_mode<synchronous>, transform_indices = @transform_2, window_bounds = array<i64: 1, 512>}, {transform_indices = @transform_3, window_bounds = array<i64: 16, 256>}, {pipeline_mode = #tpu.pipeline_mode<synchronous>, transform_indices = @transform_4, window_bounds = array<i64: 2, 256>}]} {
    %c0_i32 = arith.constant 0 : i32
    %0 = arith.cmpi eq, %arg0, %c0_i32 : i32
    %1 = arith.extui %0 : i1 to i32
    %c0_i32_0 = arith.constant 0 : i32
    %2 = arith.cmpi ne, %1, %c0_i32_0 : i32
    scf.if %2 {
      %cst_26 = arith.constant 0.000000e+00 : f32
      %45 = vector.broadcast %cst_26 : f32 to vector<2x256xf32>
      %c0_27 = arith.constant 0 : index
      %c0_28 = arith.constant 0 : index
      %46 = vector.load %arg5[%c0_27, %c0_28] : memref<2x256xf32, #tpu.memory_space<vmem>>, vector<2x256xf32>
      tpu.vector_store %arg5[%c0_27, %c0_28], %45 {strides = array<i32>} : memref<2x256xf32, #tpu.memory_space<vmem>>, vector<2x256xf32>,
    } else {
    }
    %c0 = arith.constant 0 : index
    %c0_1 = arith.constant 0 : index
    %c0_2 = arith.constant 0 : index
    %3 = vector.load %arg1[%c0, %c0_1, %c0_2] : memref<1x18x136xf32, #tpu.memory_space<vmem>>, vector<1x18x136xf32>
    %4 = vector.shape_cast %3 : vector<1x18x136xf32> to vector<18x136xf32>
    %cst = arith.constant 0.000000e+00 : f32
    %5 = vector.broadcast %cst : f32 to vector<16x512xf32>
    %6 = vector.extract_strided_slice %4 {offsets = [0, 0], sizes = [16, 136], strides = [1, 1]} : vector<18x136xf32> to vector<16x136xf32>
    %c0_3 = arith.constant 0 : index
    %c0_4 = arith.constant 0 : index
    %c0_5 = arith.constant 0 : index
    %7 = vector.load %arg2[%c0_3, %c0_4, %c0_5] : memref<3x136x512xf32, #tpu.memory_space<vmem>>, vector<1x136x512xf32>
    %8 = vector.shape_cast %7 : vector<1x136x512xf32> to vector<136x512xf32>
    %cst_6 = arith.constant dense<0.000000e+00> : vector<16x512xf32>
    %9 = tpu.matmul %6, %8, %cst_6 {dimension_numbers = #tpu.dot_dimension_numbers<[1], [0], [0], [1], [0, 0, 1, 1], [], []>} : vector<16x136xf32>, vector<136x512xf32>, vector<16x512xf32> -> vector<16x512xf32>
    %10 = arith.addf %5, %9 : vector<16x512xf32>
    %11 = vector.extract_strided_slice %4 {offsets = [1, 0], sizes = [16, 136], strides = [1, 1]} : vector<18x136xf32> to vector<16x136xf32>
    %c1 = arith.constant 1 : index
    %c0_7 = arith.constant 0 : index
    %c0_8 = arith.constant 0 : index
    %12 = vector.load %arg2[%c1, %c0_7, %c0_8] : memref<3x136x512xf32, #tpu.memory_space<vmem>>, vector<1x136x512xf32>
    %13 = vector.shape_cast %12 : vector<1x136x512xf32> to vector<136x512xf32>
    %cst_9 = arith.constant dense<0.000000e+00> : vector<16x512xf32>
    %14 = tpu.matmul %11, %13, %cst_9 {dimension_numbers = #tpu.dot_dimension_numbers<[1], [0], [0], [1], [0, 0, 1, 1], [], []>} : vector<16x136xf32>, vector<136x512xf32>, vector<16x512xf32> -> vector<16x512xf32>
    %15 = arith.addf %10, %14 : vector<16x512xf32>
    %16 = vector.extract_strided_slice %4 {offsets = [2, 0], sizes = [16, 136], strides = [1, 1]} : vector<18x136xf32> to vector<16x136xf32>
    %c2 = arith.constant 2 : index
    %c0_10 = arith.constant 0 : index
    %c0_11 = arith.constant 0 : index
    %17 = vector.load %arg2[%c2, %c0_10, %c0_11] : memref<3x136x512xf32, #tpu.memory_space<vmem>>, vector<1x136x512xf32>
    %18 = vector.shape_cast %17 : vector<1x136x512xf32> to vector<136x512xf32>
    %cst_12 = arith.constant dense<0.000000e+00> : vector<16x512xf32>
    %19 = tpu.matmul %16, %18, %cst_12 {dimension_numbers = #tpu.dot_dimension_numbers<[1], [0], [0], [1], [0, 0, 1, 1], [], []>} : vector<16x136xf32>, vector<136x512xf32>, vector<16x512xf32> -> vector<16x512xf32>
    %20 = arith.addf %15, %19 : vector<16x512xf32>
    %c0_13 = arith.constant 0 : index
    %c0_14 = arith.constant 0 : index
    %21 = vector.load %arg3[%c0_13, %c0_14] : memref<1x512xf32, #tpu.memory_space<vmem>>, vector<1x512xf32>
    %22 = vector.broadcast %21 : vector<1x512xf32> to vector<16x512xf32>
    %23 = arith.addf %20, %22 : vector<16x512xf32>
    %24 = vector.extract_strided_slice %23 {offsets = [0, 0], sizes = [16, 256], strides = [1, 1]} : vector<16x512xf32> to vector<16x256xf32>
    %25 = vector.extract_strided_slice %23 {offsets = [0, 256], sizes = [16, 256], strides = [1, 1]} : vector<16x512xf32> to vector<16x256xf32>
    %cst_15 = arith.constant 0.000000e+00 : f32
    %26 = vector.broadcast %cst_15 : f32 to vector<16x256xf32>
    %27 = arith.subf %26, %25 : vector<16x256xf32>
    %28 = math.exp %27 : vector<16x256xf32>
    %cst_16 = arith.constant 1.000000e+00 : f32
    %29 = vector.broadcast %cst_16 : f32 to vector<16x256xf32>
    %30 = arith.addf %29, %28 : vector<16x256xf32>
    %31 = tpu.reciprocal %30 : vector<16x256xf32> -> vector<16x256xf32>
    %cst_17 = arith.constant 0.000000e+00 : f32
    %32 = vector.broadcast %cst_17 : f32 to vector<16x256xf32>
    %33 = arith.maximumf %24, %32 : vector<16x256xf32>
    %34 = arith.mulf %33, %31 : vector<16x256xf32>
    %c0_18 = arith.constant 0 : index
    %c0_19 = arith.constant 0 : index
    %35 = vector.load %arg4[%c0_18, %c0_19] : memref<16x256xf32, #tpu.memory_space<vmem>>, vector<16x256xf32>
    tpu.vector_store %arg4[%c0_18, %c0_19], %34 {strides = array<i32>} : memref<16x256xf32, #tpu.memory_space<vmem>>, vector<16x256xf32>,
    %cst_20 = arith.constant dense<0.000000e+00> : vector<256xf32>
    %36 = vector.multi_reduction <add>, %34, %cst_20 [0] : vector<16x256xf32> to vector<256xf32>
    %37 = vector.shape_cast %36 : vector<256xf32> to vector<1x256xf32>
    %38 = arith.mulf %34, %34 : vector<16x256xf32>
    %cst_21 = arith.constant dense<0.000000e+00> : vector<256xf32>
    %39 = vector.multi_reduction <add>, %38, %cst_21 [0] : vector<16x256xf32> to vector<256xf32>
    %40 = vector.shape_cast %39 : vector<256xf32> to vector<1x256xf32>
    %c0_22 = arith.constant 0 : index
    %c0_23 = arith.constant 0 : index
    %41 = vector.load %arg5[%c0_22, %c0_23] : memref<2x256xf32, #tpu.memory_space<vmem>>, vector<2x256xf32>
    %42 = tpu.concatenate %37, %40 in 0 : vector<1x256xf32>, vector<1x256xf32> -> vector<2x256xf32>
    %43 = arith.addf %41, %42 : vector<2x256xf32>
    %c0_24 = arith.constant 0 : index
    %c0_25 = arith.constant 0 : index
    %44 = vector.load %arg5[%c0_24, %c0_25] : memref<2x256xf32, #tpu.memory_space<vmem>>, vector<2x256xf32>
    tpu.vector_store %arg5[%c0_24, %c0_25], %43 {strides = array<i32>} : memref<2x256xf32, #tpu.memory_space<vmem>>, vector<2x256xf32>,
    return
  }
  func.func @transform_0(%arg0: i32) -> (i32, i32, i32) {
    %c0_i32 = arith.constant 0 : i32
    %c0_i32_0 = arith.constant 0 : i32
    %c0_i32_1 = arith.constant 0 : i32
    return %arg0, %c0_i32, %c0_i32_0 : i32, i32, i32
  }
  func.func @transform_1(%arg0: i32) -> (i32, i32, i32) {
    %c0_i32 = arith.constant 0 : i32
    %c0_i32_0 = arith.constant 0 : i32
    %c0_i32_1 = arith.constant 0 : i32
    %c0_i32_2 = arith.constant 0 : i32
    return %c0_i32, %c0_i32_0, %c0_i32_1 : i32, i32, i32
  }
  func.func @transform_2(%arg0: i32) -> (i32, i32) {
    %c0_i32 = arith.constant 0 : i32
    %c0_i32_0 = arith.constant 0 : i32
    %c0_i32_1 = arith.constant 0 : i32
    return %c0_i32, %c0_i32_0 : i32, i32
  }
  func.func @transform_3(%arg0: i32) -> (i32, i32) {
    %c0_i32 = arith.constant 0 : i32
    %c0_i32_0 = arith.constant 0 : i32
    return %arg0, %c0_i32 : i32, i32
  }
  func.func @transform_4(%arg0: i32) -> (i32, i32) {
    %c0_i32 = arith.constant 0 : i32
    %c0_i32_0 = arith.constant 0 : i32
    %c0_i32_1 = arith.constant 0 : i32
    return %c0_i32, %c0_i32_0 : i32, i32
  }
}

</mosaic_0001>

<bundles_post_ra>
// kernel: tile.21
= control target key start
LH: loop header
LB: loop body
LE: loop exit
PB: predicated region body
PF: predicated region fallthrough
CT: control target
= control target key end

     0   :  { %s7_s6 = smov 3  ;;  %s21_s9 = smov 3  ;;  %vm4_vm0 = vcmask 64512   ;;  %vm11_vm1 = vcmask 1048512   ;;  %vm18_vm2 = vcmask 982912   ;;  %vm25_vm3 = vcmask 917312   ;;  %s223_s0 = inlined_call_operand.vmem [shape: f32[32,8], index: 0, kind: input, shape index: {}]   ;;  %s224_s1 = inlined_call_operand.vmem [shape: f32[256], index: 1, kind: output, shape index: {}]  }
   0x1   :  { %v117_v0 = vld [vmem:[%s223_s0 + $0xf] ss:$16 sm:%s7_s6]   ;;  %s147_s10 = smov 120   ;;  %v119_v1 = vld [vmem:[%s223_s0 + $0xd] ss:$16 sm:%s21_s9]   ;;  %s14_s13 = smov 3 }
   0x2   :  { %9 = vrot.lane.b32.xlu0 %v117_v0, %s147_s10  ;;  %s148_s14 = smov 104   ;;  %v118_v2 = vld [vmem:[%s223_s0 + $0xe] ss:$16 sm:%s14_s13]   ;;  %s28_s17 = smov 3  ;;  %vm32_vm4 = vcmask 851712   ;;  %vm39_vm5 = vcmask 786112  }
   0x3   :  { %23 = vrot.lane.b32.xlu1 %v119_v1, %s148_s14  ;;  %v120_v3 = vld [vmem:[%s223_s0 + $0xc] ss:$16 sm:%s28_s17]   ;;  %s35_s20 = smov 3  ;;  %s42_s21 = smov 3  ;;  %vm46_vm6 = vcmask 720512   ;;  %vm53_vm7 = vcmask 654912  }
   0x4   :  { %s149_s22 = smov 112   ;;  %s150_s23 = smov 96   ;;  %v121_v4 = vld [vmem:[%s223_s0 + $0xb] ss:$16 sm:%s35_s20]   ;;  %v122_v5 = vld [vmem:[%s223_s0 + $0xa] ss:$16 sm:%s42_s21]  }
   0x5   :  { %s49_s28 = smov 3  ;;  %s56_s29 = smov 3  ;;  %vm60_vm8 = vcmask 589312   ;;  %vm67_vm9 = vcmask 523712   ;;  %vm74_vm10 = vcmask 458112   ;;  %vm81_vm11 = vcmask 392512  }
   0x6   :  { %16 = vrot.lane.b32.xlu0 %v118_v2, %s149_s22  ;;  %s151_s30 = smov 88   ;;  %s152_s2 = smov 80   ;;  %v123_v6 = vld [vmem:[%s223_s0 + $0x9] ss:$16 sm:%s49_s28]   ;;  %vm88_vm12 = vcmask 326912   ;;  %vm95_vm13 = vcmask 261312  }
   0x7   :  { %30 = vrot.lane.b32.xlu1 %v120_v3, %s150_s23  ;;  %v124_v7 = vld [vmem:[%s223_s0 + $0x8] ss:$16 sm:%s56_s29]   ;;  %s63_s7 = smov 3  ;;  %s70_s8 = smov 3  ;;  %vm102_vm14 = vcmask 195712   ;;  %vm109_vm15 = vcmask 130112  }
   0x8   :  { %s153_s9 = smov 72   ;;  %s154_s10 = smov 64   ;;  %v125_v8 = vld [vmem:[%s223_s0 + $0x7] ss:$16 sm:%s63_s7]   ;;  %v126_v9 = vld [vmem:[%s223_s0 + $0x6] ss:$16 sm:%s70_s8]  }
   0x9   :  { %s2_s13 = smov 3  ;;  %s77_s16 = smov 3 }
   0xa   :  { %37 = vrot.lane.b32.xlu0 %v121_v4, %s151_s30  ;;  %v3_v10 = vld [vmem:[%s223_s0] ss:$16 sm:%s2_s13]   ;;  %s84_s19 = smov 3  ;;  %s155_s20 = smov 56  }
   0xb   :  { %44 = vrot.lane.b32.xlu1 %v122_v5, %s152_s2  ;;  %5 = vst.msk [vmem:[#allocation0] sm:$0x3] %vm4_vm0, %v3_v10   ;;  %s156_s21 = smov 48   ;;  %v127_v11 = vld [vmem:[%s223_s0 + $0x5] ss:$16 sm:%s77_s16]   ;;  %s91_s26 = smov 3 }
   0xc   :  { %v128_v12 = vld [vmem:[%s223_s0 + $0x4] ss:$16 sm:%s84_s19]   ;;  %s98_s27 = smov 3  ;;  %s157_s28 = smov 40   ;;  %v129_v13 = vld [vmem:[%s223_s0 + $0x3] ss:$16 sm:%s91_s26]  }
   0xd   :  { %s158_s29 = smov 32   ;;  %v130_v14 = vld [vmem:[%s223_s0 + $0x2] ss:$16 sm:%s98_s27]   ;;  %s105_s5 = smov 3 }
   0xe   :  { %51 = vrot.lane.b32.xlu0 %v123_v6, %s153_s9  ;;  %s159_s6 = smov 24   ;;  %s160_s7 = smov 16   ;;  %v131_v15 = vld [vmem:[%s223_s0 + $0x1] ss:$16 sm:%s105_s5]  }
   0xf   :  { %58 = vrot.lane.b32.xlu1 %v124_v7, %s154_s10  ;;  %s161_s0 = smov 8  }
  0x12   :  { %65 = vrot.lane.b32.xlu0 %v125_v8, %s155_s20 }
  0x13   :  { %72 = vrot.lane.b32.xlu1 %v126_v9, %s156_s21 }
  0x16   :  { %79 = vrot.lane.b32.xlu0 %v127_v11, %s157_s28 }
  0x17   :  { %86 = vrot.lane.b32.xlu1 %v128_v12, %s158_s29 }
  0x1a   :  { %93 = vrot.lane.b32.xlu0 %v129_v13, %s159_s6 }
  0x1b   :  { %100 = vrot.lane.b32.xlu1 %v130_v14, %s160_s7 }
  0x1e   :  { %107 = vrot.lane.b32.xlu0 %v131_v15, %s161_s0 }
  0x74   :  { %v10_v16 = vpop.permute.xlu0 %9  }
  0x75   :  { %12 = vst.msk [vmem:[#allocation0] sm:$0x3] %vm11_vm1, %v10_v16   ;;  %v24_v17 = vpop.permute.xlu1 %23  }
  0x78   :  { %v17_v18 = vpop.permute.xlu0 %16  }
  0x79   :  { %19 = vst.msk [vmem:[#allocation0] sm:$0x3] %vm18_vm2, %v17_v18   ;;  %v31_v19 = vpop.permute.xlu1 %30  }
  0x7a   :  { %26 = vst.msk [vmem:[#allocation0] sm:$0x3] %vm25_vm3, %v24_v17  }
  0x7b   :  { %33 = vst.msk [vmem:[#allocation0] sm:$0x3] %vm32_vm4, %v31_v19  }
  0x7c   :  { %v38_v20 = vpop.permute.xlu0 %37  }
  0x7d   :  { %40 = vst.msk [vmem:[#allocation0] sm:$0x3] %vm39_vm5, %v38_v20   ;;  %v45_v21 = vpop.permute.xlu1 %44  }
  0x7e   :  { %47 = vst.msk [vmem:[#allocation0] sm:$0x3] %vm46_vm6, %v45_v21  }
  0x80   :  { %v52_v22 = vpop.permute.xlu0 %51  }
  0x81   :  { %54 = vst.msk [vmem:[#allocation0] sm:$0x3] %vm53_vm7, %v52_v22   ;;  %v59_v23 = vpop.permute.xlu1 %58  }
  0x82   :  { %61 = vst.msk [vmem:[#allocation0] sm:$0x3] %vm60_vm8, %v59_v23  }
  0x84   :  { %v66_v24 = vpop.permute.xlu0 %65  }
  0x85   :  { %68 = vst.msk [vmem:[#allocation0] sm:$0x3] %vm67_vm9, %v66_v24   ;;  %v73_v25 = vpop.permute.xlu1 %72  }
  0x86   :  { %75 = vst.msk [vmem:[#allocation0] sm:$0x3] %vm74_vm10, %v73_v25  }
  0x88   :  { %v80_v26 = vpop.permute.xlu0 %79  }
  0x89   :  { %82 = vst.msk [vmem:[#allocation0] sm:$0x3] %vm81_vm11, %v80_v26   ;;  %v87_v27 = vpop.permute.xlu1 %86  }
  0x8a   :  { %89 = vst.msk [vmem:[#allocation0] sm:$0x3] %vm88_vm12, %v87_v27  }
  0x8c   :  { %v94_v28 = vpop.permute.xlu0 %93  }
  0x8d   :  { %96 = vst.msk [vmem:[#allocation0] sm:$0x3] %vm95_vm13, %v94_v28   ;;  %v101_v29 = vpop.permute.xlu1 %100  }
  0x8e   :  { %103 = vst.msk [vmem:[#allocation0] sm:$0x3] %vm102_vm14, %v101_v29  }
  0x90   :  { %v108_v30 = vpop.permute.xlu0 %107  }
  0x91   :  { %110 = vst.msk [vmem:[#allocation0] sm:$0x3] %vm109_vm15, %v108_v30  }
  0x98   :  { %v114_v31 = vld [vmem:[#allocation0] sm:$0x3] }
  0x99   :  { %116 = vst [vmem:[%s224_s1] sm:$0x3] %v114_v31 }

// kernel: tile.20
= control target key start
LH: loop header
LB: loop body
LE: loop exit
PB: predicated region body
PF: predicated region fallthrough
CT: control target
= control target key end

     0   :  { %s40_s0 = inlined_call_operand.vmem [shape: f32[8], index: 0, kind: input, shape index: {}]   ;;  %s41_s1 = inlined_call_operand.vmem [shape: f32[32,8], index: 1, kind: output, shape index: {}]  }
   0x1   :  { %v4_v0 = vld [vmem:[%s40_s0] ss:$0 sm:$0xff] }
   0x2   :  { %5 = vst [vmem:[%s41_s1] sm:$0xff] %v4_v0  ;;  %12 = vst [vmem:[%s41_s1 + $0x8] sm:$0xff] %v4_v0 }
   0x3   :  { %13 = vst [vmem:[%s41_s1 + $0x10] sm:$0xff] %v4_v0  ;;  %14 = vst [vmem:[%s41_s1 + $0x18] sm:$0xff] %v4_v0 }

// kernel: squeeze.2
= control target key start
LH: loop header
LB: loop body
LE: loop exit
PB: predicated region body
PF: predicated region fallthrough
CT: control target
= control target key end

     0   :  { %s130_s8 = smov 104   ;;  %s131_s9 = smov 112   ;;  %vm7_vm0 = vcmask 64512   ;;  %s221_s0 = inlined_call_operand.vmem [shape: f32[256], index: 0, kind: input, shape index: {}]   ;;  %s222_s1 = inlined_call_operand.vmem [shape: f32[32,8], index: 1, kind: output, shape index: {}]  }
   0x1   :  { %v4_v0 = vld [vmem:[%s221_s0] sm:$0x3]  ;;  %s129_s0 = smov 120   ;;  %s132_s10 = smov 96  }
   0x2   :  { %5 = vst [vmem:[#allocation0] sm:$0x3] %v4_v0  ;;  %s133_s11 = smov 88   ;;  %s134_s12 = smov 80  }
   0x3   :  { %s135_s13 = smov 72   ;;  %s136_s14 = smov 64  }
   0x4   :  { %s137_s17 = smov 56   ;;  %s138_s18 = smov 48  }
   0x5   :  { %s139_s19 = smov 40   ;;  %s140_s20 = smov 32  }
   0x6   :  { %s141_s21 = smov 24   ;;  %s142_s22 = smov 16  }
   0x7   :  { %s143_s23 = smov 8  }
   0x9   :  { %v9_v1 = vld [vmem:[#allocation0] sm:$0x3]  }
   0xa   :  { %v21_v2 = vld [vmem:[#allocation0] sm:$0x3]   ;;  %10 = vrot.lane.b32.xlu0 %v9_v1, %s129_s0 }
   0xb   :  { %22 = vrot.lane.b32.xlu1 %v21_v2, %s130_s8  ;;  %v15_v3 = vld [vmem:[#allocation0] sm:$0x3]  }
   0xc   :  { %v27_v4 = vld [vmem:[#allocation0] sm:$0x3]  }
   0xd   :  { %v33_v5 = vld [vmem:[#allocation0] sm:$0x3]  }
   0xe   :  { %16 = vrot.lane.b32.xlu0 %v15_v3, %s131_s9  ;;  %v39_v6 = vld [vmem:[#allocation0] sm:$0x3]  }
   0xf   :  { %28 = vrot.lane.b32.xlu1 %v27_v4, %s132_s10  ;;  %v45_v7 = vld [vmem:[#allocation0] sm:$0x3]  }
  0x10   :  { %v51_v8 = vld [vmem:[#allocation0] sm:$0x3]  }
  0x11   :  { %v57_v9 = vld [vmem:[#allocation0] sm:$0x3]  }
  0x12   :  { %34 = vrot.lane.b32.xlu0 %v33_v5, %s133_s11  ;;  %v63_v10 = vld [vmem:[#allocation0] sm:$0x3]  }
  0x13   :  { %40 = vrot.lane.b32.xlu1 %v39_v6, %s134_s12  ;;  %v6_v11 = vld [vmem:[#allocation0] sm:$0x3]  }
  0x14   :  { %8 = vst.msk [vmem:[%s222_s1] ss:$16 sm:$0x3] %vm7_vm0, %v6_v11   ;;  %v69_v12 = vld [vmem:[#allocation0] sm:$0x3]  }
  0x15   :  { %v75_v13 = vld [vmem:[#allocation0] sm:$0x3]  }
  0x16   :  { %46 = vrot.lane.b32.xlu0 %v45_v7, %s135_s13  ;;  %v81_v14 = vld [vmem:[#allocation0] sm:$0x3]  }
  0x17   :  { %52 = vrot.lane.b32.xlu1 %v51_v8, %s136_s14  ;;  %v87_v15 = vld [vmem:[#allocation0] sm:$0x3]  }
  0x18   :  { %v93_v16 = vld [vmem:[#allocation0] sm:$0x3]  }
  0x1a   :  { %58 = vrot.lane.b32.xlu0 %v57_v9, %s137_s17 }
  0x1b   :  { %64 = vrot.lane.b32.xlu1 %v63_v10, %s138_s18 }
  0x1e   :  { %70 = vrot.lane.b32.xlu0 %v69_v12, %s139_s19 }
  0x1f   :  { %76 = vrot.lane.b32.xlu1 %v75_v13, %s140_s20 }
  0x22   :  { %82 = vrot.lane.b32.xlu0 %v81_v14, %s141_s21 }
  0x23   :  { %88 = vrot.lane.b32.xlu1 %v87_v15, %s142_s22 }
  0x26   :  { %94 = vrot.lane.b32.xlu0 %v93_v16, %s143_s23 }
  0x7c   :  { %v11_v17 = vpop.permute.xlu0 %10  }
  0x7d   :  { %v23_v18 = vpop.permute.xlu1 %22   ;;  %99 = vst.msk [vmem:[%s222_s1 + $0x1] ss:$16 sm:$0x3] %vm7_vm0, %v11_v17  }
  0x7e   :  { %101 = vst.msk [vmem:[%s222_s1 + $0x3] ss:$16 sm:$0x3] %vm7_vm0, %v23_v18  }
  0x80   :  { %v17_v19 = vpop.permute.xlu0 %16  }
  0x81   :  { %v29_v20 = vpop.permute.xlu1 %28   ;;  %100 = vst.msk [vmem:[%s222_s1 + $0x2] ss:$16 sm:$0x3] %vm7_vm0, %v17_v19  }
  0x82   :  { %102 = vst.msk [vmem:[%s222_s1 + $0x4] ss:$16 sm:$0x3] %vm7_vm0, %v29_v20  }
  0x84   :  { %v35_v21 = vpop.permute.xlu0 %34  }
  0x85   :  { %v41_v22 = vpop.permute.xlu1 %40   ;;  %103 = vst.msk [vmem:[%s222_s1 + $0x5] ss:$16 sm:$0x3] %vm7_vm0, %v35_v21  }
  0x86   :  { %104 = vst.msk [vmem:[%s222_s1 + $0x6] ss:$16 sm:$0x3] %vm7_vm0, %v41_v22  }
  0x88   :  { %v47_v23 = vpop.permute.xlu0 %46  }
  0x89   :  { %v53_v24 = vpop.permute.xlu1 %52   ;;  %105 = vst.msk [vmem:[%s222_s1 + $0x7] ss:$16 sm:$0x3] %vm7_vm0, %v47_v23  }
  0x8a   :  { %106 = vst.msk [vmem:[%s222_s1 + $0x8] ss:$16 sm:$0x3] %vm7_vm0, %v53_v24  }
  0x8c   :  { %v59_v25 = vpop.permute.xlu0 %58  }
  0x8d   :  { %v65_v26 = vpop.permute.xlu1 %64   ;;  %107 = vst.msk [vmem:[%s222_s1 + $0x9] ss:$16 sm:$0x3] %vm7_vm0, %v59_v25  }
  0x8e   :  { %108 = vst.msk [vmem:[%s222_s1 + $0xa] ss:$16 sm:$0x3] %vm7_vm0, %v65_v26  }
  0x90   :  { %v71_v27 = vpop.permute.xlu0 %70  }
  0x91   :  { %v77_v28 = vpop.permute.xlu1 %76   ;;  %109 = vst.msk [vmem:[%s222_s1 + $0xb] ss:$16 sm:$0x3] %vm7_vm0, %v71_v27  }
  0x92   :  { %110 = vst.msk [vmem:[%s222_s1 + $0xc] ss:$16 sm:$0x3] %vm7_vm0, %v77_v28  }
  0x94   :  { %v83_v29 = vpop.permute.xlu0 %82  }
  0x95   :  { %v89_v30 = vpop.permute.xlu1 %88   ;;  %111 = vst.msk [vmem:[%s222_s1 + $0xd] ss:$16 sm:$0x3] %vm7_vm0, %v83_v29  }
  0x96   :  { %112 = vst.msk [vmem:[%s222_s1 + $0xe] ss:$16 sm:$0x3] %vm7_vm0, %v89_v30  }
  0x98   :  { %v95_v31 = vpop.permute.xlu0 %94  }
  0x99   :  { %113 = vst.msk [vmem:[%s222_s1 + $0xf] ss:$16 sm:$0x3] %vm7_vm0, %v95_v31  }

// kernel: tile.30
= control target key start
LH: loop header
LB: loop body
LE: loop exit
PB: predicated region body
PF: predicated region fallthrough
CT: control target
= control target key end

     0   :  { %s7_s6 = smov 3  ;;  %s21_s9 = smov 3  ;;  %vm4_vm0 = vcmask 64512   ;;  %vm11_vm1 = vcmask 1048512   ;;  %vm18_vm2 = vcmask 982912   ;;  %vm25_vm3 = vcmask 917312   ;;  %s232_s0 = inlined_call_operand.vmem [shape: f32[32,8], index: 0, kind: input, shape index: {}]   ;;  %s233_s1 = inlined_call_operand.vmem [shape: f32[1,256], index: 1, kind: output, shape index: {}]  }
   0x1   :  { %v122_v0 = vld [vmem:[%s232_s0 + $0xf] ss:$16 sm:%s7_s6]   ;;  %s153_s10 = smov 120   ;;  %v124_v1 = vld [vmem:[%s232_s0 + $0xd] ss:$16 sm:%s21_s9]   ;;  %s14_s13 = smov 3 }
   0x2   :  { %9 = vrot.lane.b32.xlu0 %v122_v0, %s153_s10  ;;  %s154_s14 = smov 104   ;;  %v123_v2 = vld [vmem:[%s232_s0 + $0xe] ss:$16 sm:%s14_s13]   ;;  %s28_s17 = smov 3  ;;  %vm32_vm4 = vcmask 851712   ;;  %vm39_vm5 = vcmask 786112  }
   0x3   :  { %23 = vrot.lane.b32.xlu1 %v124_v1, %s154_s14  ;;  %v125_v3 = vld [vmem:[%s232_s0 + $0xc] ss:$16 sm:%s28_s17]   ;;  %s35_s20 = smov 3  ;;  %s42_s21 = smov 3  ;;  %vm46_vm6 = vcmask 720512   ;;  %vm53_vm7 = vcmask 654912  }
   0x4   :  { %s155_s22 = smov 112   ;;  %s156_s23 = smov 96   ;;  %v126_v4 = vld [vmem:[%s232_s0 + $0xb] ss:$16 sm:%s35_s20]   ;;  %v127_v5 = vld [vmem:[%s232_s0 + $0xa] ss:$16 sm:%s42_s21]  }
   0x5   :  { %s49_s28 = smov 3  ;;  %s56_s29 = smov 3  ;;  %vm60_vm8 = vcmask 589312   ;;  %vm67_vm9 = vcmask 523712   ;;  %vm74_vm10 = vcmask 458112   ;;  %vm81_vm11 = vcmask 392512  }
   0x6   :  { %16 = vrot.lane.b32.xlu0 %v123_v2, %s155_s22  ;;  %s157_s30 = smov 88   ;;  %s158_s2 = smov 80   ;;  %v128_v6 = vld [vmem:[%s232_s0 + $0x9] ss:$16 sm:%s49_s28]   ;;  %vm88_vm12 = vcmask 326912   ;;  %vm95_vm13 = vcmask 261312  }
   0x7   :  { %30 = vrot.lane.b32.xlu1 %v125_v3, %s156_s23  ;;  %v129_v7 = vld [vmem:[%s232_s0 + $0x8] ss:$16 sm:%s56_s29]   ;;  %s63_s7 = smov 3  ;;  %s70_s8 = smov 3  ;;  %vm102_vm14 = vcmask 195712   ;;  %vm109_vm15 = vcmask 130112  }
   0x8   :  { %s159_s9 = smov 72   ;;  %s160_s10 = smov 64   ;;  %v130_v8 = vld [vmem:[%s232_s0 + $0x7] ss:$16 sm:%s63_s7]   ;;  %v131_v9 = vld [vmem:[%s232_s0 + $0x6] ss:$16 sm:%s70_s8]  }
   0x9   :  { %s2_s13 = smov 3  ;;  %s77_s16 = smov 3 }
   0xa   :  { %37 = vrot.lane.b32.xlu0 %v126_v4, %s157_s30  ;;  %v3_v10 = vld [vmem:[%s232_s0] ss:$16 sm:%s2_s13]   ;;  %s84_s19 = smov 3  ;;  %s161_s20 = smov 56  }
   0xb   :  { %44 = vrot.lane.b32.xlu1 %v127_v5, %s158_s2  ;;  %5 = vst.msk [vmem:[#allocation0] ss:$8 sm:$0x3] %vm4_vm0, %v3_v10   ;;  %s162_s21 = smov 48   ;;  %v132_v11 = vld [vmem:[%s232_s0 + $0x5] ss:$16 sm:%s77_s16]  }
   0xc   :  { %v133_v12 = vld [vmem:[%s232_s0 + $0x4] ss:$16 sm:%s84_s19]   ;;  %s91_s26 = smov 3  ;;  %s98_s27 = smov 3 }
   0xd   :  { %s163_s28 = smov 40   ;;  %s164_s29 = smov 32   ;;  %v134_v13 = vld [vmem:[%s232_s0 + $0x3] ss:$16 sm:%s91_s26]   ;;  %v135_v14 = vld [vmem:[%s232_s0 + $0x2] ss:$16 sm:%s98_s27]  }
   0xe   :  { %51 = vrot.lane.b32.xlu0 %v128_v6, %s159_s9  ;;  %s105_s5 = smov 3  ;;  %s165_s6 = smov 24  }
   0xf   :  { %58 = vrot.lane.b32.xlu1 %v129_v7, %s160_s10  ;;  %s166_s7 = smov 16   ;;  %v136_v15 = vld [vmem:[%s232_s0 + $0x1] ss:$16 sm:%s105_s5]   ;;  %s167_s0 = smov 8  }
  0x12   :  { %65 = vrot.lane.b32.xlu0 %v130_v8, %s161_s20 }
  0x13   :  { %72 = vrot.lane.b32.xlu1 %v131_v9, %s162_s21 }
  0x16   :  { %79 = vrot.lane.b32.xlu0 %v132_v11, %s163_s28 }
  0x17   :  { %86 = vrot.lane.b32.xlu1 %v133_v12, %s164_s29 }
  0x1a   :  { %93 = vrot.lane.b32.xlu0 %v134_v13, %s165_s6 }
  0x1b   :  { %100 = vrot.lane.b32.xlu1 %v135_v14, %s166_s7 }
  0x1e   :  { %107 = vrot.lane.b32.xlu0 %v136_v15, %s167_s0 }
  0x74   :  { %v10_v16 = vpop.permute.xlu0 %9  }
  0x75   :  { %12 = vst.msk [vmem:[#allocation0] ss:$8 sm:$0x3] %vm11_vm1, %v10_v16   ;;  %v24_v17 = vpop.permute.xlu1 %23  }
  0x78   :  { %v17_v18 = vpop.permute.xlu0 %16  }
  0x79   :  { %19 = vst.msk [vmem:[#allocation0] ss:$8 sm:$0x3] %vm18_vm2, %v17_v18   ;;  %v31_v19 = vpop.permute.xlu1 %30  }
  0x7a   :  { %26 = vst.msk [vmem:[#allocation0] ss:$8 sm:$0x3] %vm25_vm3, %v24_v17  }
  0x7b   :  { %33 = vst.msk [vmem:[#allocation0] ss:$8 sm:$0x3] %vm32_vm4, %v31_v19  }
  0x7c   :  { %v38_v20 = vpop.permute.xlu0 %37  }
  0x7d   :  { %40 = vst.msk [vmem:[#allocation0] ss:$8 sm:$0x3] %vm39_vm5, %v38_v20   ;;  %v45_v21 = vpop.permute.xlu1 %44  }
  0x7e   :  { %47 = vst.msk [vmem:[#allocation0] ss:$8 sm:$0x3] %vm46_vm6, %v45_v21  }
  0x80   :  { %v52_v22 = vpop.permute.xlu0 %51  }
  0x81   :  { %54 = vst.msk [vmem:[#allocation0] ss:$8 sm:$0x3] %vm53_vm7, %v52_v22   ;;  %v59_v23 = vpop.permute.xlu1 %58  }
  0x82   :  { %61 = vst.msk [vmem:[#allocation0] ss:$8 sm:$0x3] %vm60_vm8, %v59_v23  }
  0x84   :  { %v66_v24 = vpop.permute.xlu0 %65  }
  0x85   :  { %68 = vst.msk [vmem:[#allocation0] ss:$8 sm:$0x3] %vm67_vm9, %v66_v24   ;;  %v73_v25 = vpop.permute.xlu1 %72  }
  0x86   :  { %75 = vst.msk [vmem:[#allocation0] ss:$8 sm:$0x3] %vm74_vm10, %v73_v25  }
  0x88   :  { %v80_v26 = vpop.permute.xlu0 %79  }
  0x89   :  { %82 = vst.msk [vmem:[#allocation0] ss:$8 sm:$0x3] %vm81_vm11, %v80_v26   ;;  %v87_v27 = vpop.permute.xlu1 %86  }
  0x8a   :  { %89 = vst.msk [vmem:[#allocation0] ss:$8 sm:$0x3] %vm88_vm12, %v87_v27  }
  0x8c   :  { %v94_v28 = vpop.permute.xlu0 %93  }
  0x8d   :  { %96 = vst.msk [vmem:[#allocation0] ss:$8 sm:$0x3] %vm95_vm13, %v94_v28   ;;  %v101_v29 = vpop.permute.xlu1 %100  }
  0x8e   :  { %103 = vst.msk [vmem:[#allocation0] ss:$8 sm:$0x3] %vm102_vm14, %v101_v29  }
  0x90   :  { %v108_v30 = vpop.permute.xlu0 %107  }
  0x91   :  { %110 = vst.msk [vmem:[#allocation0] ss:$8 sm:$0x3] %vm109_vm15, %v108_v30  }
  0x98   :  { %v114_v31 = vld [vmem:[#allocation0] sm:$0x1]  ;;  %v118_v32 = vld [vmem:[#allocation0 + $0x8] sm:$0x1] }
  0x99   :  { %116 = vst [vmem:[%s233_s1] sm:$0x1] %v114_v31  ;;  %137 = vst [vmem:[%s233_s1 + $0x1] sm:$0x1] %v118_v32 }

// kernel: _lambda_.3
= control target key start
LH: loop header
LB: loop body
LE: loop exit
PB: predicated region body
PF: predicated region fallthrough
CT: control target
= control target key end

     0   :  { %s328_s12 = smov 0   ;;  %s351_s0 = inlined_call_operand.vmem [shape: f32[64,256], index: 0, kind: input, shape index: {}, may-alias: {0,3}]   ;;  %s352_s1 = inlined_call_operand.vmem [shape: f32[1,256], index: 1, kind: input, shape index: {}]   ;;  %s353_s2 = inlined_call_operand.vmem [shape: f32[1,256], index: 2, kind: input, shape index: {}]   ;;  %s354_s3 = inlined_call_operand.vmem [shape: f32[64,256], index: 3, kind: output, shape index: {}, may-alias: {0,3}]  }
   0x1 LB: > { %s277_s13 = sadd.s32 4294967295, %s306_s12   ;;  %p281_p0 = scmp.ge.s32.totalorder %s306_s12, 1  ;;  %s306_s12 = sphi %s328_s12, %s13_s12  }
   0x2   : > { %p139_p1 = scmp.lt.s32.totalorder %s306_s12, 5 }
   0x4   : > { %p140_p2 = pnand %p281_p0, %p139_p1 }
   0x5   : > { %s282_s14 = sshll.u32 (!%p140_p2), %s277_s13, 1  ;;  %v185_v0 = vlaneseq (!%p140_p2)  ;;  %v183_v2 = vld [vmem:[%s352_s1] sm:$0x3] (!%p140_p2) }
   0x6   : > { %143 = sbr.rel (%p140_p2) target bundleno = 23 (0x17), region = 32  ;;  %p166_p3 = scmp.lt.s32.totalorder (!%p140_p2), %s282_s14, 7  ;;  %v199_v3 = vld [vmem:[%s353_s2] sm:$0x3] (!%p140_p2) }
   0x7   : > { %v186_v1 = vshrl.u32 (!%p140_p2), %v185_v0, 7 }
   0x9   : > { %v187_v4 = vsub.s32 (!%p140_p2), 0, %v186_v1  ;;  %v191_v5 = vsub.s32 (!%p140_p2), 1, %v186_v1 }
   0xb   : > { %v188_v6 = vrot.slane (!%p140_p2), %v183_v2, %v187_v4  ;;  %v204_v7 = vrot.slane (!%p140_p2), %v199_v3, %v187_v4  ;;  %v192_v8 = vrot.slane (!%p140_p2), %v183_v2, %v191_v5  ;;  %v208_v9 = vrot.slane (!%p140_p2), %v199_v3, %v191_v5 }
   0xd   : > { %s356_s14 = smov (!%p166_p3, %s282_s14), 7 }
   0xe   : > { %s290_s19 = sshll.u32 %s356_s14, 4 }
   0xf   : > { %s170_s22 = scalar_lea.vmem %s351_s0, %s290_s19  ;;  %s177_s25 = scalar_lea.vmem %s354_s3, %s290_s19 }
  0x10   : > { %v179_v10 = vld [vmem:[%s170_s22] sm:$0xff]  ;;  %v181_v11 = vld [vmem:[%s170_s22 + $0x10] sm:$0xff]  ;;  %v180_v12 = vld [vmem:[%s170_s22 + $0x8] sm:$0xff] }
  0x11   : > { %v195_v13 = vmul.f32 %v188_v6, %v179_v10  ;;  %v197_v14 = vmul.f32 %v188_v6, %v181_v11  ;;  %v182_v15 = vld [vmem:[%s170_s22 + $0x18] sm:$0xff]  ;;  %v196_v16 = vmul.f32 %v192_v8, %v180_v12 }
  0x12   : > { %v198_v17 = vmul.f32 %v192_v8, %v182_v15 }
  0x13   : > { %v211_v18 = vadd.f32 %v204_v7, %v195_v13  ;;  %v212_v19 = vadd.f32 %v208_v9, %v196_v16  ;;  %v213_v20 = vadd.f32 %v204_v7, %v197_v14 }
  0x14   : > { %v214_v21 = vadd.f32 %v208_v9, %v198_v17 }
  0x15   : > { %215 = vst [vmem:[%s177_s25] sm:$0xff] %v211_v18  ;;  %216 = vst [vmem:[%s177_s25 + $0x8] sm:$0xff] %v212_v19 }
  0x16   : > { %217 = vst [vmem:[%s177_s25 + $0x10] sm:$0xff] %v213_v20  ;;  %218 = vst [vmem:[%s177_s25 + $0x18] sm:$0xff] %v214_v21 }
  0x17 PF: > { %s13_s12 = sadd.s32 1, %s306_s12  }
  0x18   : > { %p10_p4 = scmp.ge.s32.totalorder %s13_s12, 6  }
  0x1a   :  { %12 = sbr.rel (!%p10_p4) target bundleno = 1 (0x1), region = 62 }

// kernel: _lambda_.2
= control target key start
LH: loop header
LB: loop body
LE: loop exit
PB: predicated region body
PF: predicated region fallthrough
CT: control target
= control target key end

     0   :  { %s1537_s15 = smov 0   ;;  %s2271_s0 = inlined_call_operand.vmem [shape: f32[4,18,136], index: 0, kind: input, shape index: {}]   ;;  %s2272_s1 = inlined_call_operand.vmem [shape: f32[3,136,512], index: 1, kind: input, shape index: {}]   ;;  %s2273_s2 = inlined_call_operand.vmem [shape: f32[1,512], index: 2, kind: input, shape index: {}]   ;;  %s2274_s3 = inlined_call_operand.vmem [shape: f32[64,256], index: 3, kind: output, shape index: {0}]   ;;  %s2275_s4 = inlined_call_operand.vmem [shape: f32[2,256], index: 4, kind: output, shape index: {1}]  }
   0x1 LB: > { %s1106_s16 = sadd.s32 4294967295, %s1508_s15   ;;  %p1110_p0 = scmp.ge.s32.totalorder %s1508_s15, 1  ;;  %s1508_s15 = sphi %s1537_s15, %s15_s15  }
   0x2   : > { %p160_p1 = scmp.lt.s32.totalorder %s1508_s15, 5 }
   0x4   : > { %p161_p2 = pnand %p1110_p0, %p160_p1 }
   0x5   : > { %p187_p3 = scmp.lt.s32.totalorder (!%p161_p2), %s1106_s16, 3  ;;  %s1112_s17 = sshll.u32 (!%p161_p2), %s1106_s16, 1 }
   0x6   : > { %164 = sbr.rel (%p161_p2) target bundleno = 403 (0x193), region = 32  ;;  %p193_p4 = scmp.lt.s32.totalorder (!%p161_p2), %s1112_s17, 7 }
   0x7   : > { %p1115_p5 = scmp.ne.s32.totalorder (!%p161_p2), %s1106_s16, 0 }
   0xd   : > { %s188_s18 = scalar_select %p187_p3, %s1106_s16, 3 }
   0xe   : > { %s2277_s17 = smov (!%p193_p4, %s1112_s17), 7  ;;  %202 = sbr.rel (%p1115_p5) target bundleno = 21 (0x15), region = 36 }
   0xf   : > { %s1475_s19 = smul.u32 48, %s188_s18  ;;  %s1266_s20 = sshll.u32 %s2277_s17, 4  ;;  %v1510_v0 = vmov (!%p1115_p5), 0.0  }
  0x10   : > { %s1553_s26 = scalar_lea.vmem %s2274_s3, %s1266_s20  ;;  %203 = vst [vmem:[%s2275_s4] sm:$0xf] (!%p1115_p5), %v1510_v0 }
  0x11   : > { %s1548_s23 = scalar_lea.vmem %s2271_s0, %s1475_s19 }
  0x15 PF: > { %v1117_v1 = vld [vmem:[%s2272_s1 + $0x228] sm:$0xff]  ;;  %v1119_v3 = vld [vmem:[%s2272_s1 + $0x238] sm:$0xff]  ;;  %v1116_v6 = vld [vmem:[%s2272_s1 + $0x220] sm:$0xff]  ;;  %vm353_vm0 = vcmask 1046528   ;;  %vm366_vm1 = vcmask 64512   ;;  %vm752_vm2 = vcmask 1045504  }
  0x16   : > { %v1121_v2 = vld [vmem:[%s2272_s1 + $0x248] sm:$0xff]  ;;  %v1123_v5 = vld [vmem:[%s2272_s1 + $0x258] sm:$0xff]  ;;  %v1120_v7 = vld [vmem:[%s2272_s1 + $0x240] sm:$0xff]  ;;  %vm1026_vm3 = vcmask 1040384  }
  0x17   : > { %v1267_v4 = vpack.c.bf16 %v1121_v2, %v1117_v1  ;;  %v1299_v8 = vpack.c.bf16 %v1123_v5, %v1119_v3  ;;  %v1269_v9 = vpack.c.bf16 %v1120_v7, %v1116_v6  ;;  %v1118_v10 = vld [vmem:[%s2272_s1 + $0x230] sm:$0xff]  ;;  %v1125_v12 = vld [vmem:[%s2272_s1 + $0x268] sm:$0xff]  ;;  %v1127_v15 = vld [vmem:[%s2272_s1 + $0x278] sm:$0xff] }
  0x18   : > { %v1122_v11 = vld [vmem:[%s2272_s1 + $0x250] sm:$0xff]  ;;  %v1129_v14 = vld [vmem:[%s2272_s1 + $0x288] sm:$0xff]  ;;  %v1131_v16 = vld [vmem:[%s2272_s1 + $0x298] sm:$0xff] }
  0x19   : > { %1268 = vmatprep.subr.bf16.mxu0 %v1267_v4  ;;  %v1301_v13 = vpack.c.bf16 %v1122_v11, %v1118_v10  ;;  %1300 = vmatprep.subr.bf16.mxu1 %v1299_v8  ;;  %v1271_v17 = vpack.c.bf16 %v1129_v14, %v1125_v12  ;;  %v1303_v18 = vpack.c.bf16 %v1131_v16, %v1127_v15  ;;  %v1124_v19 = vld [vmem:[%s2272_s1 + $0x260] sm:$0xff]  ;;  %v1126_v21 = vld [vmem:[%s2272_s1 + $0x270] sm:$0xff]  ;;  %v1133_v24 = vld [vmem:[%s2272_s1 + $0x2a8] sm:$0xff] }
  0x1a   : > { %1270 = vmatpush1.bf16.msra.mxu0 %v1269_v9  ;;  %v1128_v20 = vld [vmem:[%s2272_s1 + $0x280] sm:$0xff]  ;;  %v1130_v23 = vld [vmem:[%s2272_s1 + $0x290] sm:$0xff]  ;;  %v1137_v25 = vld [vmem:[%s2272_s1 + $0x2c8] sm:$0xff] }
  0x1b   : > { %1302 = vmatpush1.bf16.msra.mxu1 %v1301_v13  ;;  %v1273_v22 = vpack.c.bf16 %v1128_v20, %v1124_v19  ;;  %1272 = vmatprep.subr.bf16.mxu0 %v1271_v17  ;;  %v1305_v26 = vpack.c.bf16 %v1130_v23, %v1126_v21  ;;  %v1275_v27 = vpack.c.bf16 %v1137_v25, %v1133_v24  ;;  %v1135_v28 = vld [vmem:[%s2272_s1 + $0x2b8] sm:$0xff]  ;;  %v1132_v30 = vld [vmem:[%s2272_s1 + $0x2a0] sm:$0xff]  ;;  %v1134_v33 = vld [vmem:[%s2272_s1 + $0x2b0] sm:$0xff] }
  0x1c   : > { %1304 = vmatprep.subr.bf16.mxu1 %v1303_v18  ;;  %v1139_v29 = vld [vmem:[%s2272_s1 + $0x2d8] sm:$0xff]  ;;  %v1136_v32 = vld [vmem:[%s2272_s1 + $0x2c0] sm:$0xff]  ;;  %v1138_v34 = vld [vmem:[%s2272_s1 + $0x2d0] sm:$0xff] }
  0x1d   : > { %v1307_v31 = vpack.c.bf16 %v1139_v29, %v1135_v28  ;;  %v1277_v35 = vpack.c.bf16 %v1136_v32, %v1132_v30  ;;  %v1141_v36 = vld [vmem:[%s2272_s1 + $0x2e8] sm:$0xff]  ;;  %v1143_v38 = vld [vmem:[%s2272_s1 + $0x2f8] sm:$0xff]  ;;  %v1309_v39 = vpack.c.bf16 %v1138_v34, %v1134_v33  ;;  %v1140_v42 = vld [vmem:[%s2272_s1 + $0x2e0] sm:$0xff] }
  0x1e   : > { %1274 = vmatpush1.bf16.msra.mxu0 %v1273_v22  ;;  %v1145_v37 = vld [vmem:[%s2272_s1 + $0x308] sm:$0xff]  ;;  %v1147_v41 = vld [vmem:[%s2272_s1 + $0x318] sm:$0xff]  ;;  %v1144_v43 = vld [vmem:[%s2272_s1 + $0x300] sm:$0xff] }
  0x1f   : > { %1306 = vmatpush1.bf16.msra.mxu1 %v1305_v26  ;;  %1276 = vmatprep.subr.bf16.mxu0 %v1275_v27  ;;  %v1279_v40 = vpack.c.bf16 %v1145_v37, %v1141_v36  ;;  %v1311_v44 = vpack.c.bf16 %v1147_v41, %v1143_v38  ;;  %v1142_v45 = vld [vmem:[%s2272_s1 + $0x2f0] sm:$0xff]  ;;  %v1149_v47 = vld [vmem:[%s2272_s1 + $0x328] sm:$0xff]  ;;  %v1151_v49 = vld [vmem:[%s2272_s1 + $0x338] sm:$0xff]  ;;  %v1281_v51 = vpack.c.bf16 %v1144_v43, %v1140_v42 }
  0x20   : > { %1308 = vmatprep.subr.bf16.mxu1 %v1307_v31  ;;  %v1146_v46 = vld [vmem:[%s2272_s1 + $0x310] sm:$0xff]  ;;  %v1153_v48 = vld [vmem:[%s2272_s1 + $0x348] sm:$0xff]  ;;  %v1155_v50 = vld [vmem:[%s2272_s1 + $0x358] sm:$0xff] }
  0x21   : > { %v1313_v52 = vpack.c.bf16 %v1146_v46, %v1142_v45  ;;  %v1283_v53 = vpack.c.bf16 %v1153_v48, %v1149_v47  ;;  %v1148_v54 = vld [vmem:[%s2272_s1 + $0x320] sm:$0xff]  ;;  %v1150_v56 = vld [vmem:[%s2272_s1 + $0x330] sm:$0xff]  ;;  %v1315_v57 = vpack.c.bf16 %v1155_v50, %v1151_v49  ;;  %v1157_v59 = vld [vmem:[%s2272_s1 + $0x368] sm:$0xff] }
  0x22   : > { %1278 = vmatpush1.bf16.msra.mxu0 %v1277_v35  ;;  %v1152_v55 = vld [vmem:[%s2272_s1 + $0x340] sm:$0xff]  ;;  %v1154_v58 = vld [vmem:[%s2272_s1 + $0x350] sm:$0xff]  ;;  %v1161_v60 = vld [vmem:[%s2272_s1 + $0x388] sm:$0xff] }
  0x23   : > { %1310 = vmatpush1.bf16.msra.mxu1 %v1309_v39  ;;  %1280 = vmatprep.subr.bf16.mxu0 %v1279_v40  ;;  %v1159_v61 = vld [vmem:[%s2272_s1 + $0x378] sm:$0xff]  ;;  %v1285_v63 = vpack.c.bf16 %v1152_v55, %v1148_v54  ;;  %v1317_v0 = vpack.c.bf16 %v1154_v58, %v1150_v56  ;;  %v1287_v1 = vpack.c.bf16 %v1161_v60, %v1157_v59  ;;  %v1156_v2 = vld [vmem:[%s2272_s1 + $0x360] sm:$0xff]  ;;  %v1158_v4 = vld [vmem:[%s2272_s1 + $0x370] sm:$0xff] }
  0x24   : > { %1312 = vmatprep.subr.bf16.mxu1 %v1311_v44  ;;  %v1163_v62 = vld [vmem:[%s2272_s1 + $0x398] sm:$0xff]  ;;  %v1160_v3 = vld [vmem:[%s2272_s1 + $0x380] sm:$0xff]  ;;  %v1162_v6 = vld [vmem:[%s2272_s1 + $0x390] sm:$0xff] }
  0x25   : > { %v1319_v5 = vpack.c.bf16 %v1163_v62, %v1159_v61  ;;  %v1165_v7 = vld [vmem:[%s2272_s1 + $0x3a8] sm:$0xff]  ;;  %v1167_v9 = vld [vmem:[%s2272_s1 + $0x3b8] sm:$0xff]  ;;  %v1289_v11 = vpack.c.bf16 %v1160_v3, %v1156_v2  ;;  %v1164_v12 = vld [vmem:[%s2272_s1 + $0x3a0] sm:$0xff]  ;;  %v1321_v13 = vpack.c.bf16 %v1162_v6, %v1158_v4 }
  0x26   : > { %1282 = vmatpush1.bf16.msra.mxu0 %v1281_v51  ;;  %v1169_v8 = vld [vmem:[%s2272_s1 + $0x3c8] sm:$0xff]  ;;  %v1171_v10 = vld [vmem:[%s2272_s1 + $0x3d8] sm:$0xff]  ;;  %v1168_v15 = vld [vmem:[%s2272_s1 + $0x3c0] sm:$0xff] }
  0x27   : > { %1314 = vmatpush1.bf16.msra.mxu1 %v1313_v52  ;;  %1284 = vmatprep.subr.bf16.mxu0 %v1283_v53  ;;  %v1291_v14 = vpack.c.bf16 %v1169_v8, %v1165_v7  ;;  %v1166_v16 = vld [vmem:[%s2272_s1 + $0x3b0] sm:$0xff]  ;;  %v1323_v18 = vpack.c.bf16 %v1171_v10, %v1167_v9  ;;  %v1173_v19 = vld [vmem:[%s2272_s1 + $0x3e8] sm:$0xff]  ;;  %v1175_v22 = vld [vmem:[%s2272_s1 + $0x3f8] sm:$0xff]  ;;  %v1293_v26 = vpack.c.bf16 %v1168_v15, %v1164_v12 }
  0x28   : > { %1316 = vmatprep.subr.bf16.mxu1 %v1315_v57  ;;  %v1170_v17 = vld [vmem:[%s2272_s1 + $0x3d0] sm:$0xff]  ;;  %v1177_v20 = vld [vmem:[%s2272_s1 + $0x408] sm:$0xff]  ;;  %v1179_v23 = vld [vmem:[%s2272_s1 + $0x418] sm:$0xff] }
  0x29   : > { %v1733_v21 = vld [vmem:[%s1548_s23 + $0x8] sm:$0xff]  ;;  %v1742_v24 = vld [vmem:[%s1548_s23 + $0x18] sm:$0xff]  ;;  %v1747_v28 = vld [vmem:[%s1548_s23] sm:$0xff]  ;;  %v1325_v29 = vpack.c.bf16 %v1170_v17, %v1166_v16  ;;  %v1295_v30 = vpack.c.bf16 %v1177_v20, %v1173_v19  ;;  %v1327_v34 = vpack.c.bf16 %v1179_v23, %v1175_v22 }
  0x2a   : > { %1286 = vmatpush1.bf16.msra.mxu0 %v1285_v63  ;;  %v357_v25 = vrot.slane %v1733_v21, 1  ;;  %v358_v27 = vrot.slane %v1742_v24, 1  ;;  %v1172_v31 = vld [vmem:[%s2272_s1 + $0x3e0] sm:$0xff]  ;;  %v753_v33 = vrot.slane %v1747_v28, 2  ;;  %v1174_v35 = vld [vmem:[%s2272_s1 + $0x3f0] sm:$0xff]  ;;  %v1181_v42 = vld [vmem:[%s2272_s1 + $0x428] sm:$0xff] }
  0x2b   : > { %1318 = vmatpush1.bf16.msra.mxu1 %v1317_v0  ;;  %1288 = vmatprep.subr.bf16.mxu0 %v1287_v1  ;;  %v1176_v32 = vld [vmem:[%s2272_s1 + $0x400] sm:$0xff]  ;;  %v1178_v36 = vld [vmem:[%s2272_s1 + $0x410] sm:$0xff]  ;;  %v1183_v44 = vld [vmem:[%s2272_s1 + $0x438] sm:$0xff]  ;;  %v354_v50 = vrot.slane %v1747_v28, 1 }
  0x2c   : > { %1320 = vmatprep.subr.bf16.mxu1 %v1319_v5  ;;  %v359_v37 = vsel %vm353_vm0, %v357_v25, %v358_v27  ;;  %v1766_v38 = vld [vmem:[%s1548_s23 + $0x10] sm:$0xff]  ;;  %v1297_v40 = vpack.c.bf16 %v1176_v32, %v1172_v31  ;;  %v1329_v41 = vpack.c.bf16 %v1178_v36, %v1174_v35  ;;  %v211_v45 = vld [vmem:[%s2272_s1 + $0x8] sm:$0xff]  ;;  %v1180_v47 = vld [vmem:[%s2272_s1 + $0x420] sm:$0xff] }
  0x2d   : > { %1184 = vmatprep.mubr.msk.f32.mxu0 %vm366_vm1, %v359_v37  ;;  %1186 = vmatprep.mubr.msk.f32.mxu1 %vm366_vm1, %v359_v37  ;;  %v754_v39 = vrot.slane %v1766_v38, 2  ;;  %v215_v46 = vld [vmem:[%s2272_s1 + $0x28] sm:$0xff]  ;;  %v213_v48 = vld [vmem:[%s2272_s1 + $0x18] sm:$0xff]  ;;  %v355_v51 = vrot.slane %v1766_v38, 1  ;;  %v210_v52 = vld [vmem:[%s2272_s1] sm:$0xff] }
  0x2e   : > { %1290 = vmatpush1.bf16.msra.mxu0 %v1289_v11  ;;  %v217_v49 = vld [vmem:[%s2272_s1 + $0x38] sm:$0xff]  ;;  %v214_v53 = vld [vmem:[%s2272_s1 + $0x20] sm:$0xff]  ;;  %v212_v54 = vld [vmem:[%s2272_s1 + $0x10] sm:$0xff]  ;;  %v1331_v55 = vpack.c.bf16 %v215_v46, %v211_v45 }
  0x2f   : > { %1322 = vmatpush1.bf16.msra.mxu1 %v1321_v13  ;;  %1292 = vmatprep.subr.bf16.mxu0 %v1291_v14  ;;  %v1777_v43 = vsel %vm752_vm2, %v753_v33, %v754_v39  ;;  %v216_v56 = vld [vmem:[%s2272_s1 + $0x30] sm:$0xff]  ;;  %v219_v57 = vld [vmem:[%s2272_s1 + $0x48] sm:$0xff]  ;;  %v1363_v60 = vpack.c.bf16 %v217_v49, %v213_v48  ;;  %v221_v61 = vld [vmem:[%s2272_s1 + $0x58] sm:$0xff]  ;;  %v356_v63 = vsel %vm353_vm0, %v354_v50, %v355_v51 }
  0x30   : > { %1324 = vmatprep.subr.bf16.mxu1 %v1323_v18  ;;  %v223_v58 = vld [vmem:[%s2272_s1 + $0x68] sm:$0xff]  ;;  %v1182_v59 = vld [vmem:[%s2272_s1 + $0x430] sm:$0xff]  ;;  %v225_v62 = vld [vmem:[%s2272_s1 + $0x78] sm:$0xff]  ;;  %v1333_v0 = vpack.c.bf16 %v214_v53, %v210_v52  ;;  %v1365_v1 = vpack.c.bf16 %v216_v56, %v212_v54 }
  0x31   : > { %v1335_v2 = vpack.c.bf16 %v223_v58, %v219_v57  ;;  %v218_v3 = vld [vmem:[%s2272_s1 + $0x40] sm:$0xff]  ;;  %v220_v5 = vld [vmem:[%s2272_s1 + $0x50] sm:$0xff]  ;;  %v1367_v6 = vpack.c.bf16 %v225_v62, %v221_v61  ;;  %v227_v8 = vld [vmem:[%s2272_s1 + $0x88] sm:$0xff] }
  0x32   : > { %1294 = vmatpush1.bf16.msra.mxu0 %v1293_v26  ;;  %v222_v4 = vld [vmem:[%s2272_s1 + $0x60] sm:$0xff]  ;;  %v224_v7 = vld [vmem:[%s2272_s1 + $0x70] sm:$0xff]  ;;  %v231_v9 = vld [vmem:[%s2272_s1 + $0xa8] sm:$0xff] }
  0x33   : > { %1326 = vmatpush1.bf16.msra.mxu1 %v1325_v29  ;;  %1296 = vmatprep.subr.bf16.mxu0 %v1295_v30  ;;  %v229_v10 = vld [vmem:[%s2272_s1 + $0x98] sm:$0xff]  ;;  %v1337_v12 = vpack.c.bf16 %v222_v4, %v218_v3  ;;  %v1369_v13 = vpack.c.bf16 %v224_v7, %v220_v5  ;;  %v1339_v14 = vpack.c.bf16 %v231_v9, %v227_v8  ;;  %v226_v15 = vld [vmem:[%s2272_s1 + $0x80] sm:$0xff]  ;;  %v228_v17 = vld [vmem:[%s2272_s1 + $0x90] sm:$0xff] }
  0x34   : > { %1328 = vmatprep.subr.bf16.mxu1 %v1327_v34  ;;  %v233_v11 = vld [vmem:[%s2272_s1 + $0xb8] sm:$0xff]  ;;  %v230_v16 = vld [vmem:[%s2272_s1 + $0xa0] sm:$0xff]  ;;  %v232_v19 = vld [vmem:[%s2272_s1 + $0xb0] sm:$0xff] }
  0x35   : > { %v1371_v18 = vpack.c.bf16 %v233_v11, %v229_v10  ;;  %v235_v20 = vld [vmem:[%s2272_s1 + $0xc8] sm:$0xff]  ;;  %v237_v23 = vld [vmem:[%s2272_s1 + $0xd8] sm:$0xff]  ;;  %v1341_v26 = vpack.c.bf16 %v230_v16, %v226_v15  ;;  %v234_v29 = vld [vmem:[%s2272_s1 + $0xc0] sm:$0xff]  ;;  %v1373_v31 = vpack.c.bf16 %v232_v19, %v228_v17 }
  0x36   : > { %1298 = vmatpush1.bf16.msra.mxu0 %v1297_v40  ;;  %v239_v22 = vld [vmem:[%s2272_s1 + $0xe8] sm:$0xff]  ;;  %v241_v25 = vld [vmem:[%s2272_s1 + $0xf8] sm:$0xff]  ;;  %v238_v30 = vld [vmem:[%s2272_s1 + $0xe0] sm:$0xff] }
  0x37   : > { %1330 = vmatpush1.bf16.msra.mxu1 %v1329_v41  ;;  %403 = vmatprep.subr.mxu0 %v1181_v42  ;;  %v1343_v32 = vpack.c.bf16 %v239_v22, %v235_v20  ;;  %v236_v33 = vld [vmem:[%s2272_s1 + $0xd0] sm:$0xff]  ;;  %v243_v35 = vld [vmem:[%s2272_s1 + $0x108] sm:$0xff]  ;;  %v1375_v36 = vpack.c.bf16 %v241_v25, %v237_v23  ;;  %v1899_v41 = vld [vmem:[%s1548_s23 + $0x20] sm:$0x3] }
  0x38   : > { %480 = vmatprep.subr.mxu1 %v1183_v44  ;;  %v240_v34 = vld [vmem:[%s2272_s1 + $0xf0] sm:$0xff]  ;;  %v247_v37 = vld [vmem:[%s2272_s1 + $0x128] sm:$0xff]  ;;  %v245_v42 = vld [vmem:[%s2272_s1 + $0x118] sm:$0xff]  ;;  %v360_v46 = vrot.slane %v1899_v41, 1 }
  0x39   : > { %v1896_v40 = vld [vmem:[%s1548_s23 + $0x28] sm:$0x3]  ;;  %v249_v44 = vld [vmem:[%s2272_s1 + $0x138] sm:$0xff]  ;;  %v1377_v48 = vpack.c.bf16 %v240_v34, %v236_v33  ;;  %v1347_v49 = vpack.c.bf16 %v247_v37, %v243_v35  ;;  %v242_v50 = vld [vmem:[%s2272_s1 + $0x100] sm:$0xff] }
  0x3a   : > { %404 = vmatpush1.msra.mxu0 %v1180_v47  ;;  %v362_v45 = vrot.slane %v1896_v40, 1  ;;  %v1345_v47 = vpack.c.bf16 %v238_v30, %v234_v29  ;;  %v246_v52 = vld [vmem:[%s2272_s1 + $0x120] sm:$0xff]  ;;  %v244_v53 = vld [vmem:[%s2272_s1 + $0x110] sm:$0xff]  ;;  %v1379_v56 = vpack.c.bf16 %v249_v44, %v245_v42  ;;  %v251_v58 = vld [vmem:[%s2272_s1 + $0x148] sm:$0xff] }
  0x3b   : > { %481 = vmatpush1.msra.mxu1 %v1182_v59  ;;  %1332 = vmatprep.subr.bf16.mxu0 %v1331_v55  ;;  %v361_v55 = vsel %vm353_vm0, %v355_v51, %v360_v46  ;;  %v248_v57 = vld [vmem:[%s2272_s1 + $0x130] sm:$0xff]  ;;  %v255_v59 = vld [vmem:[%s2272_s1 + $0x168] sm:$0xff]  ;;  %v257_v51 = vld [vmem:[%s2272_s1 + $0x178] sm:$0xff] }
  0x3c   : > { %1364 = vmatprep.subr.bf16.mxu1 %v1363_v60  ;;  %436 = vmatmul.mubr.f32.vlgmr.msra.gmra.mrb[0].mxu0 %v356_v63  ;;  %v363_v54 = vsel %vm353_vm0, %v358_v27, %v362_v45  ;;  %v253_v27 = vld [vmem:[%s2272_s1 + $0x158] sm:$0xff]  ;;  %v1349_v60 = vpack.c.bf16 %v246_v52, %v242_v50  ;;  %v1381_v61 = vpack.c.bf16 %v248_v57, %v244_v53  ;;  %v256_v3 = vld [vmem:[%s2272_s1 + $0x170] sm:$0xff]  ;;  %v259_v4 = vld [vmem:[%s2272_s1 + $0x188] sm:$0xff] }
  0x3d   : > { %513 = vmatmul.mubr.f32.vlgmr.msra.gmra.mrb[0].mxu1 %v356_v63  ;;  %1334 = vmatpush1.bf16.msra.mxu0 %v1333_v0  ;;  %v1351_v62 = vpack.c.bf16 %v255_v59, %v251_v58  ;;  %v250_v63 = vld [vmem:[%s2272_s1 + $0x140] sm:$0xff]  ;;  %v263_v5 = vld [vmem:[%s2272_s1 + $0x1a8] sm:$0xff]  ;;  %v265_v7 = vld [vmem:[%s2272_s1 + $0x1b8] sm:$0xff] }
  0x3e   : > { %1366 = vmatpush1.bf16.msra.mxu1 %v1365_v1  ;;  %1336 = vmatprep.subr.bf16.mxu0 %v1335_v2  ;;  %v254_v0 = vld [vmem:[%s2272_s1 + $0x160] sm:$0xff]  ;;  %v252_v1 = vld [vmem:[%s2272_s1 + $0x150] sm:$0xff]  ;;  %v1383_v2 = vpack.c.bf16 %v257_v51, %v253_v27  ;;  %v1355_v10 = vpack.c.bf16 %v263_v5, %v259_v4  ;;  %v267_v16 = vld [vmem:[%s2272_s1 + $0x1c8] sm:$0xff]  ;;  %v756_v4 = vrot.slane %v1733_v21, 2  ;;  %v757_v5 = vrot.slane %v1742_v24, 2 }
  0x3f   : > { %1368 = vmatprep.subr.bf16.mxu1 %v1367_v6  ;;  %1185 = vmatprep.mubr.msk.f32.mxu0 %vm366_vm1, %v363_v54  ;;  %v261_v6 = vld [vmem:[%s2272_s1 + $0x198] sm:$0xff]  ;;  %v1353_v8 = vpack.c.bf16 %v254_v0, %v250_v63  ;;  %v1385_v9 = vpack.c.bf16 %v256_v3, %v252_v1  ;;  %v258_v11 = vld [vmem:[%s2272_s1 + $0x180] sm:$0xff]  ;;  %v264_v15 = vld [vmem:[%s2272_s1 + $0x1b0] sm:$0xff] }
  0x40   : > { %1187 = vmatprep.mubr.msk.f32.mxu1 %vm366_vm1, %v363_v54  ;;  %442 = vmatmul.mubr.f32.gmra.mrb[2].mxu0 %v361_v55  ;;  %v271_v17 = vld [vmem:[%s2272_s1 + $0x1e8] sm:$0xff]  ;;  %v273_v19 = vld [vmem:[%s2272_s1 + $0x1f8] sm:$0xff]  ;;  %v266_v25 = vld [vmem:[%s2272_s1 + $0x1c0] sm:$0xff] }
  0x41   : > { %1338 = vmatpush1.bf16.msra.mxu0 %v1337_v12  ;;  %519 = vmatmul.mubr.f32.gmra.mrb[2].mxu1 %v361_v55  ;;  %v262_v12 = vld [vmem:[%s2272_s1 + $0x1a0] sm:$0xff]  ;;  %v1359_v23 = vpack.c.bf16 %v271_v17, %v267_v16  ;;  %v268_v30 = vld [vmem:[%s2272_s1 + $0x1d0] sm:$0xff]  ;;  %v275_v34 = vld [vmem:[%s2272_s1 + $0x208] sm:$0xff]  ;;  %v758_v16 = vsel %vm752_vm2, %v756_v4, %v757_v5 }
  0x42   : > { %1370 = vmatpush1.bf16.msra.mxu1 %v1369_v13  ;;  %1340 = vmatprep.subr.bf16.mxu0 %v1339_v14  ;;  %v260_v13 = vld [vmem:[%s2272_s1 + $0x190] sm:$0xff]  ;;  %v1387_v14 = vpack.c.bf16 %v265_v7, %v261_v6  ;;  %v1357_v20 = vpack.c.bf16 %v262_v12, %v258_v11  ;;  %v277_v35 = vld [vmem:[%s2272_s1 + $0x218] sm:$0xff]  ;;  %v1197_v37 = vld [vmem:[%s2272_s1 + $0x468] sm:$0xff] }
  0x43   : > { %1372 = vmatprep.subr.bf16.mxu1 %v1371_v18  ;;  %1188 = vmatprep.mubr.msk.f32.mxu0 %vm366_vm1, %v1733_v21  ;;  %v269_v18 = vld [vmem:[%s2272_s1 + $0x1d8] sm:$0xff]  ;;  %v1389_v22 = vpack.c.bf16 %v264_v15, %v260_v13  ;;  %v274_v42 = vld [vmem:[%s2272_s1 + $0x200] sm:$0xff]  ;;  %v1198_v50 = vld [vmem:[%s2272_s1 + $0x470] sm:$0xff] }
  0x44   : > { %1190 = vmatprep.mubr.msk.f32.mxu1 %vm366_vm1, %v1733_v21  ;;  %v1391_v29 = vpack.c.bf16 %v273_v19, %v269_v18  ;;  %v1195_v44 = vld [vmem:[%s2272_s1 + $0x458] sm:$0xff]  ;;  %v1192_v46 = vld [vmem:[%s2272_s1 + $0x440] sm:$0xff]  ;;  %v1201_v52 = vld [vmem:[%s2272_s1 + $0x488] sm:$0xff] }
  0x45   : > { %1342 = vmatpush1.bf16.msra.mxu0 %v1341_v26  ;;  %v270_v26 = vld [vmem:[%s2272_s1 + $0x1e0] sm:$0xff]  ;;  %v1199_v45 = vld [vmem:[%s2272_s1 + $0x478] sm:$0xff]  ;;  %v1205_v53 = vld [vmem:[%s2272_s1 + $0x4a8] sm:$0xff] }
  0x46   : > { %1374 = vmatpush1.bf16.msra.mxu1 %v1373_v31  ;;  %1344 = vmatprep.subr.bf16.mxu0 %v1343_v32  ;;  %v272_v31 = vld [vmem:[%s2272_s1 + $0x1f0] sm:$0xff]  ;;  %v1361_v32 = vpack.c.bf16 %v270_v26, %v266_v25  ;;  %v1427_v55 = vpack.c.bf16 %v1199_v45, %v1195_v44  ;;  %v1207_v57 = vld [vmem:[%s2272_s1 + $0x4b8] sm:$0xff]  ;;  %v1399_v27 = vpack.c.bf16 %v1205_v53, %v1201_v52  ;;  %v1200_v51 = vld [vmem:[%s2272_s1 + $0x480] sm:$0xff] }
  0x47   : > { %1376 = vmatprep.subr.bf16.mxu1 %v1375_v36  ;;  %v1393_v33 = vpack.c.bf16 %v272_v31, %v268_v30  ;;  %v1193_v36 = vld [vmem:[%s2272_s1 + $0x448] sm:$0xff]  ;;  %v276_v54 = vld [vmem:[%s2272_s1 + $0x210] sm:$0xff]  ;;  %v1215_v3 = vld [vmem:[%s2272_s1 + $0x4f8] sm:$0xff] }
  0x48   : > { %v1206_v63 = vld [vmem:[%s2272_s1 + $0x4b0] sm:$0xff]  ;;  %v1209_v0 = vld [vmem:[%s2272_s1 + $0x4c8] sm:$0xff]  ;;  %v1223_v15 = vld [vmem:[%s2272_s1 + $0x538] sm:$0xff] }
  0x49   : > { %1346 = vmatpush1.bf16.msra.mxu0 %v1345_v47  ;;  %v1196_v47 = vld [vmem:[%s2272_s1 + $0x460] sm:$0xff]  ;;  %v1213_v1 = vld [vmem:[%s2272_s1 + $0x4e8] sm:$0xff]  ;;  %v1210_v21 = vld [vmem:[%s2272_s1 + $0x4d0] sm:$0xff] }
  0x4a   : > { %1378 = vmatpush1.bf16.msra.mxu1 %v1377_v48  ;;  %1348 = vmatprep.subr.bf16.mxu0 %v1347_v49  ;;  %v1194_v48 = vld [vmem:[%s2272_s1 + $0x450] sm:$0xff]  ;;  %v1395_v49 = vpack.c.bf16 %v1197_v37, %v1193_v36  ;;  %v1397_v58 = vpack.c.bf16 %v1196_v47, %v1192_v46  ;;  %v1217_v12 = vld [vmem:[%s2272_s1 + $0x508] sm:$0xff]  ;;  %v1227_v31 = vld [vmem:[%s2272_s1 + $0x558] sm:$0xff] }
  0x4b   : > { %1380 = vmatprep.subr.bf16.mxu1 %v1379_v56  ;;  %v1203_v56 = vld [vmem:[%s2272_s1 + $0x498] sm:$0xff]  ;;  %v1429_v59 = vpack.c.bf16 %v1198_v50, %v1194_v48  ;;  %v1214_v11 = vld [vmem:[%s2272_s1 + $0x4f0] sm:$0xff]  ;;  %v1221_v13 = vld [vmem:[%s2272_s1 + $0x528] sm:$0xff] }
  0x4c   : > { %v1437_v18 = vpack.c.bf16 %v1214_v11, %v1210_v21  ;;  %v1407_v19 = vpack.c.bf16 %v1221_v13, %v1217_v12  ;;  %v1222_v26 = vld [vmem:[%s2272_s1 + $0x530] sm:$0xff]  ;;  %v1229_v30 = vld [vmem:[%s2272_s1 + $0x568] sm:$0xff]  ;;  %v1224_v36 = vld [vmem:[%s2272_s1 + $0x540] sm:$0xff] }
  0x4d   : > { %1350 = vmatpush1.bf16.msra.mxu0 %v1349_v60  ;;  %v1204_v60 = vld [vmem:[%s2272_s1 + $0x4a0] sm:$0xff]  ;;  %v1230_v45 = vld [vmem:[%s2272_s1 + $0x570] sm:$0xff]  ;;  %v1233_v46 = vld [vmem:[%s2272_s1 + $0x588] sm:$0xff] }
  0x4e   : > { %1382 = vmatpush1.bf16.msra.mxu1 %v1381_v61  ;;  %1352 = vmatprep.subr.bf16.mxu0 %v1351_v62  ;;  %v1202_v61 = vld [vmem:[%s2272_s1 + $0x490] sm:$0xff]  ;;  %v1431_v62 = vpack.c.bf16 %v1207_v57, %v1203_v56  ;;  %v1401_v6 = vpack.c.bf16 %v1204_v60, %v1200_v51  ;;  %v1228_v37 = vld [vmem:[%s2272_s1 + $0x560] sm:$0xff]  ;;  %v1237_v47 = vld [vmem:[%s2272_s1 + $0x5a8] sm:$0xff] }
  0x4f   : > { %1384 = vmatprep.subr.bf16.mxu1 %v1383_v2  ;;  %v1211_v2 = vld [vmem:[%s2272_s1 + $0x4d8] sm:$0xff]  ;;  %v1433_v7 = vpack.c.bf16 %v1206_v63, %v1202_v61  ;;  %v1413_v50 = vpack.c.bf16 %v1228_v37, %v1224_v36  ;;  %v1415_v53 = vpack.c.bf16 %v1237_v47, %v1233_v46  ;;  %v1234_v56 = vld [vmem:[%s2272_s1 + $0x590] sm:$0xff]  ;;  %v1248_v11 = vld [vmem:[%s2272_s1 + $0x600] sm:$0xff] }
  0x50   : > { %v1235_v48 = vld [vmem:[%s2272_s1 + $0x598] sm:$0xff]  ;;  %v1246_v4 = vld [vmem:[%s2272_s1 + $0x5f0] sm:$0xff]  ;;  %v1252_v12 = vld [vmem:[%s2272_s1 + $0x620] sm:$0xff] }
  0x51   : > { %1354 = vmatpush1.bf16.msra.mxu0 %v1353_v8  ;;  %v1403_v8 = vpack.c.bf16 %v1213_v1, %v1209_v0  ;;  %v1243_v51 = vld [vmem:[%s2272_s1 + $0x5d8] sm:$0xff]  ;;  %v1240_v0 = vld [vmem:[%s2272_s1 + $0x5c0] sm:$0xff] }
  0x52   : > { %1386 = vmatpush1.bf16.msra.mxu1 %v1385_v9  ;;  %1356 = vmatprep.subr.bf16.mxu0 %v1355_v10  ;;  %v1208_v9 = vld [vmem:[%s2272_s1 + $0x4c0] sm:$0xff]  ;;  %v1247_v60 = vld [vmem:[%s2272_s1 + $0x5f8] sm:$0xff] }
  0x53   : > { %1388 = vmatprep.subr.bf16.mxu1 %v1387_v14  ;;  %v1212_v10 = vld [vmem:[%s2272_s1 + $0x4e0] sm:$0xff]  ;;  %v1219_v14 = vld [vmem:[%s2272_s1 + $0x518] sm:$0xff] }
  0x54   : > { %v1405_v17 = vpack.c.bf16 %v1212_v10, %v1208_v9  ;;  %v1439_v25 = vpack.c.bf16 %v1223_v15, %v1219_v14  ;;  %v1244_v1 = vld [vmem:[%s2272_s1 + $0x5e0] sm:$0xff]  ;;  %v1255_v9 = vld [vmem:[%s2272_s1 + $0x638] sm:$0xff]  ;;  %v1250_v14 = vld [vmem:[%s2272_s1 + $0x610] sm:$0xff] }
  0x55   : > { %1358 = vmatpush1.bf16.msra.mxu0 %v1357_v20  ;;  %v1216_v20 = vld [vmem:[%s2272_s1 + $0x500] sm:$0xff]  ;;  %v1421_v10 = vpack.c.bf16 %v1244_v1, %v1240_v0  ;;  %v1254_v15 = vld [vmem:[%s2272_s1 + $0x630] sm:$0xff] }
  0x56   : > { %1390 = vmatpush1.bf16.msra.mxu1 %v1389_v22  ;;  %1360 = vmatprep.subr.bf16.mxu0 %v1359_v23  ;;  %v1220_v22 = vld [vmem:[%s2272_s1 + $0x520] sm:$0xff]  ;;  %v1218_v23 = vld [vmem:[%s2272_s1 + $0x510] sm:$0xff] }
  0x57   : > { %1392 = vmatprep.subr.bf16.mxu1 %v1391_v29  ;;  %v1225_v29 = vld [vmem:[%s2272_s1 + $0x548] sm:$0xff] }
  0x59   : > { %1362 = vmatpush1.bf16.msra.mxu0 %v1361_v32  ;;  %v1231_v32 = vld [vmem:[%s2272_s1 + $0x578] sm:$0xff] }
  0x5a   : > { %1394 = vmatpush1.bf16.msra.mxu1 %v1393_v33  ;;  %561 = vmatprep.subr.mxu0 %v275_v34  ;;  %v1409_v33 = vpack.c.bf16 %v1220_v22, %v1216_v20  ;;  %v1441_v34 = vpack.c.bf16 %v1222_v26, %v1218_v23  ;;  %v1443_v44 = vpack.c.bf16 %v1231_v32, %v1227_v31  ;;  %v761_v20 = vrot.slane %v1896_v40, 2  ;;  %v1256_v22 = vld [vmem:[%s2272_s1 + $0x640] sm:$0xff]  ;;  %v1258_v23 = vld [vmem:[%s2272_s1 + $0x650] sm:$0xff] }
  0x5b   : > { %638 = vmatprep.subr.mxu1 %v277_v35  ;;  %v1411_v35 = vpack.c.bf16 %v1229_v30, %v1225_v29  ;;  %v931_v29 = vld [vmem:[%s2273_s2] sm:$0xf] }
  0x5c   : > { %v762_v26 = vsel %vm752_vm2, %v757_v5, %v761_v20 }
  0x5d   : > { %562 = vmatpush1.msra.mxu0 %v274_v42  ;;  %v1226_v42 = vld [vmem:[%s2272_s1 + $0x550] sm:$0xff] }
  0x5e   : > { %639 = vmatpush1.msra.mxu1 %v276_v54  ;;  %1396 = vmatprep.subr.bf16.mxu0 %v1395_v49  ;;  %v1239_v49 = vld [vmem:[%s2272_s1 + $0x5b8] sm:$0xff]  ;;  %v1445_v52 = vpack.c.bf16 %v1230_v45, %v1226_v42  ;;  %v1232_v54 = vld [vmem:[%s2272_s1 + $0x580] sm:$0xff] }
  0x5f   : > { %1428 = vmatprep.subr.bf16.mxu1 %v1427_v55  ;;  %594 = vmatmul.mubr.f32.vlgmr.msra.gmra.mrb[0].mxu0 %v1747_v28  ;;  %v1236_v55 = vld [vmem:[%s2272_s1 + $0x5a0] sm:$0xff]  ;;  %v1447_v57 = vpack.c.bf16 %v1239_v49, %v1235_v48 }
  0x60   : > { %671 = vmatmul.mubr.f32.vlgmr.msra.gmra.mrb[0].mxu1 %v1747_v28  ;;  %1398 = vmatpush1.bf16.msra.mxu0 %v1397_v58  ;;  %v1435_v28 = vpack.c.bf16 %v1215_v3, %v1211_v2  ;;  %v1238_v58 = vld [vmem:[%s2272_s1 + $0x5b0] sm:$0xff]  ;;  %v1417_v61 = vpack.c.bf16 %v1236_v55, %v1232_v54  ;;  %v1451_v3 = vpack.c.bf16 %v1247_v60, %v1243_v51 }
  0x61   : > { %1430 = vmatpush1.bf16.msra.mxu1 %v1429_v59  ;;  %1400 = vmatprep.subr.bf16.mxu0 %v1399_v27  ;;  %v1241_v59 = vld [vmem:[%s2272_s1 + $0x5c8] sm:$0xff]  ;;  %v1242_v2 = vld [vmem:[%s2272_s1 + $0x5d0] sm:$0xff] }
  0x62   : > { %1432 = vmatprep.subr.bf16.mxu1 %v1431_v62  ;;  %1189 = vmatprep.mubr.msk.f32.mxu0 %vm366_vm1, %v1742_v24  ;;  %v1245_v27 = vld [vmem:[%s2272_s1 + $0x5e8] sm:$0xff]  ;;  %v1449_v62 = vpack.c.bf16 %v1238_v58, %v1234_v56  ;;  %v1453_v21 = vpack.c.bf16 %v1246_v4, %v1242_v2 }
  0x63   : > { %1191 = vmatprep.mubr.msk.f32.mxu1 %vm366_vm1, %v1742_v24  ;;  %600 = vmatmul.mubr.f32.gmra.mrb[2].mxu0 %v1766_v38  ;;  %v1419_v63 = vpack.c.bf16 %v1245_v27, %v1241_v59 }
  0x64   : > { %1402 = vmatpush1.bf16.msra.mxu0 %v1401_v6  ;;  %677 = vmatmul.mubr.f32.gmra.mrb[2].mxu1 %v1766_v38  ;;  %v1249_v6 = vld [vmem:[%s2272_s1 + $0x608] sm:$0xff] }
  0x65   : > { %1434 = vmatpush1.bf16.msra.mxu1 %v1433_v7  ;;  %1404 = vmatprep.subr.bf16.mxu0 %v1403_v8  ;;  %v1253_v7 = vld [vmem:[%s2272_s1 + $0x628] sm:$0xff]  ;;  %v1251_v8 = vld [vmem:[%s2272_s1 + $0x618] sm:$0xff] }
  0x66   : > { %1436 = vmatprep.subr.bf16.mxu1 %v1435_v28  ;;  %1260 = vmatprep.mubr.msk.f32.mxu0 %vm366_vm1, %v758_v16  ;;  %v1423_v28 = vpack.c.bf16 %v1253_v7, %v1249_v6  ;;  %v1455_v13 = vpack.c.bf16 %v1255_v9, %v1251_v8 }
  0x67   : > { %1262 = vmatprep.mubr.msk.f32.mxu1 %vm366_vm1, %v758_v16  ;;  %v1425_v16 = vpack.c.bf16 %v1252_v12, %v1248_v11 }
  0x68   : > { %1406 = vmatpush1.bf16.msra.mxu0 %v1405_v17  ;;  %v1457_v17 = vpack.c.bf16 %v1254_v15, %v1250_v14 }
  0x69   : > { %1438 = vmatpush1.bf16.msra.mxu1 %v1437_v18  ;;  %1408 = vmatprep.subr.bf16.mxu0 %v1407_v19  ;;  %v1257_v18 = vld [vmem:[%s2272_s1 + $0x648] sm:$0xff]  ;;  %v1259_v19 = vld [vmem:[%s2272_s1 + $0x658] sm:$0xff] }
  0x6a   : > { %1440 = vmatprep.subr.bf16.mxu1 %v1439_v25  ;;  %v759_v25 = vrot.slane %v1899_v41, 2  ;;  %v933_v41 = vlaneseq }
  0x6c   : > { %1410 = vmatpush1.bf16.msra.mxu0 %v1409_v33  ;;  %v760_v40 = vsel %vm752_vm2, %v754_v39, %v759_v25  ;;  %v2248_v24 = vshrl.u32 %v933_v41, 7 }
  0x6d   : > { %1442 = vmatpush1.bf16.msra.mxu1 %v1441_v34  ;;  %1412 = vmatprep.subr.bf16.mxu0 %v1411_v35 }
  0x6e   : > { %1444 = vmatprep.subr.bf16.mxu1 %v1443_v44  ;;  %v943_v5 = vsub.s32 2, %v2248_v24  ;;  %v939_v27 = vsub.s32 1, %v2248_v24 }
  0x70   : > { %1414 = vmatpush1.bf16.msra.mxu0 %v1413_v50  ;;  %v944_v30 = vrot.slane %v931_v29, %v943_v5 }
  0x71   : > { %1446 = vmatpush1.bf16.msra.mxu1 %v1445_v52  ;;  %1416 = vmatprep.subr.bf16.mxu0 %v1415_v53 }
  0x72   : > { %1448 = vmatprep.subr.bf16.mxu1 %v1447_v57  ;;  %v935_v57 = vsub.s32 0, %v2248_v24 }
  0x74   : > { %1418 = vmatpush1.bf16.msra.mxu0 %v1417_v61  ;;  %v936_v61 = vrot.slane %v931_v29, %v935_v57 }
  0x75   : > { %1450 = vmatpush1.bf16.msra.mxu1 %v1449_v62  ;;  %1420 = vmatprep.subr.bf16.mxu0 %v1419_v63  ;;  %v940_v63 = vrot.slane %v931_v29, %v939_v27  ;;  %v1025_v27 = vld [vmem:[%s2275_s4] sm:$0xf] }
  0x76   : > { %1452 = vmatprep.subr.bf16.mxu1 %v1451_v3 }
  0x78   : > { %1422 = vmatpush1.bf16.msra.mxu0 %v1421_v10 }
  0x79   : > { %1454 = vmatpush1.bf16.msra.mxu1 %v1453_v21  ;;  %1424 = vmatprep.subr.bf16.mxu0 %v1423_v28 }
  0x7a   : > { %1456 = vmatprep.subr.bf16.mxu1 %v1455_v13 }
  0x7c   : > { %1426 = vmatpush1.bf16.msra.mxu0 %v1425_v16 }
  0x7d   : > { %1458 = vmatpush1.bf16.msra.mxu1 %v1457_v17  ;;  %801 = vmatprep.subr.mxu0 %v1257_v18 }
  0x7e   : > { %878 = vmatprep.subr.mxu1 %v1259_v19 }
  0x80   : > { %802 = vmatpush1.msra.mxu0 %v1256_v22 }
  0x81   : > { %879 = vmatpush1.msra.mxu1 %v1258_v23  ;;  %834 = vmatmul.mubr.f32.vlgmr.msra.gmra.mrb[0].mxu0 %v1777_v43 }
  0x82   : > { %911 = vmatmul.mubr.f32.vlgmr.msra.gmra.mrb[0].mxu1 %v1777_v43  ;;  %1261 = vmatprep.mubr.msk.f32.mxu0 %vm366_vm1, %v762_v26  ;;  %v947_v43 = vsub.s32 3, %v2248_v24 }
  0x83   : > { %1263 = vmatprep.mubr.msk.f32.mxu1 %vm366_vm1, %v762_v26 }
  0x84   : > { %v948_v31 = vrot.slane %v931_v29, %v947_v43 }
  0x85   : > { %840 = vmatmul.mubr.f32.gmra.mrb[2].mxu0 %v760_v40 }
  0x86   : > { %917 = vmatmul.mubr.f32.gmra.mrb[2].mxu1 %v760_v40 }
 0x154   : > { %v835_v38 = vpop.f32.mrb[0].mxu0 }
 0x155   : > { %v912_v32 = vpop.f32.mrb[0].mxu1  ;;  %v837_v39 = vpop.f32.mrb[1].mxu0  ;;  %v953_v2 = vadd.f32 %v936_v61, %v835_v38 }
 0x156   : > { %v955_v33 = vadd.f32 %v944_v30, %v912_v32  ;;  %v914_v34 = vpop.f32.mrb[1].mxu1  ;;  %v954_v3 = vadd.f32 %v940_v63, %v837_v39 }
 0x157   : > { %v956_v35 = vadd.f32 %v948_v31, %v914_v34  ;;  %v981_v4 = vmax.f32 %v953_v2, 0.0 }
 0x158   : > { %v961_v36 = vsub.f32 0.0, %v955_v33  ;;  %v841_v37 = vpop.f32.mrb[2].mxu0  ;;  %v982_v8 = vmax.f32 %v954_v3, 0.0  ;;  %v1511_v33 = vmov 1983009808  }
 0x159   : > { %v962_v42 = vsub.f32 0.0, %v956_v35  ;;  %v918_v44 = vpop.f32.mrb[2].mxu1  ;;  %v843_v45 = vpop.f32.mrb[3].mxu0  ;;  %v957_v6 = vadd.f32 %v936_v61, %v841_v37  ;;  %v1033_v34 = vunpack.c.l.s4 %v1511_v33 }
 0x15a   : > { %v965_v46 = vmul.f32 1.442695, %v961_v36  ;;  %v959_v47 = vadd.f32 %v944_v30, %v918_v44  ;;  %v920_v48 = vpop.f32.mrb[3].mxu1  ;;  %v958_v9 = vadd.f32 %v940_v63, %v843_v45 }
 0x15b   : > { %v967_v49 = vmul.f32 1.442695, %v962_v42  ;;  %v960_v50 = vadd.f32 %v948_v31, %v920_v48  ;;  %v983_v11 = vmax.f32 %v957_v6, 0.0  ;;  %v1034_v48 = vunpack.c.0.s8 %v1033_v34 }
 0x15c   : > { %1486 = vpow2.f32 %v965_v46  ;;  %v963_v52 = vsub.f32 0.0, %v959_v47  ;;  %v984_v13 = vmax.f32 %v958_v9, 0.0 }
 0x15d   : > { %1488 = vpow2.f32 %v967_v49  ;;  %v964_v53 = vsub.f32 0.0, %v960_v50 }
 0x15e   : > { %v969_v54 = vmul.f32 1.442695, %v963_v52 }
 0x15f   : > { %v971_v55 = vmul.f32 1.442695, %v964_v53 }
 0x160   : > { %1490 = vpow2.f32 %v969_v54 }
 0x161   : > { %1492 = vpow2.f32 %v971_v55 }
 0x166   : > { %v1487_v56 = vpop.eup %1486 }
 0x167   : > { %v1489_v58 = vpop.eup %1488  ;;  %v973_v59 = vadd.f32 1.0, %v1487_v56  ;;  %v1037_v56 = vsub.s32 %v1034_v48, %v2248_v24 }
 0x168   : > { %v974_v51 = vadd.f32 1.0, %v1489_v58 }
 0x169   : > { %1494 = vrcp.f32 %v973_v59 }
 0x16a   : > { %v1491_v60 = vpop.eup %1490  ;;  %1496 = vrcp.f32 %v974_v51 }
 0x16b   : > { %v1493_v62 = vpop.eup %1492  ;;  %v975_v0 = vadd.f32 1.0, %v1491_v60 }
 0x16c   : > { %v976_v1 = vadd.f32 1.0, %v1493_v62 }
 0x16d   : > { %1498 = vrcp.f32 %v975_v0 }
 0x16e   : > { %1500 = vrcp.f32 %v976_v1 }
 0x173   : > { %v1495_v7 = vpop.eup %1494 }
 0x174   : > { %v1497_v10 = vpop.eup %1496  ;;  %v985_v21 = vmul.f32 %v1495_v7, %v981_v4 }
 0x175   : > { %v986_v28 = vmul.f32 %v1497_v10, %v982_v8 }
 0x176   : > { %989 = vst [vmem:[%s1553_s26] sm:$0xff] %v985_v21  ;;  %v1007_v17 = vmul.f32 %v985_v21, %v985_v21 }
 0x177   : > { %v1499_v12 = vpop.eup %1498  ;;  %990 = vst [vmem:[%s1553_s26 + $0x8] sm:$0xff] %v986_v28  ;;  %v1008_v20 = vmul.f32 %v986_v28, %v986_v28 }
 0x178   : > { %v1501_v14 = vpop.eup %1500  ;;  %v987_v15 = vmul.f32 %v1499_v12, %v983_v11 }
 0x179   : > { %v988_v16 = vmul.f32 %v1501_v14, %v984_v13 }
 0x17a   : > { %991 = vst [vmem:[%s1553_s26 + $0x10] sm:$0xff] %v987_v15  ;;  %v993_v18 = vadd.f32 %v987_v15, %v985_v21  ;;  %v1009_v19 = vmul.f32 %v987_v15, %v987_v15 }
 0x17b   : > { %992 = vst [vmem:[%s1553_s26 + $0x18] sm:$0xff] %v988_v16  ;;  %v1000_v22 = vadd.f32 %v988_v16, %v986_v28  ;;  %v1010_v23 = vmul.f32 %v988_v16, %v988_v16 }
 0x17c   : > { %v994_v25 = vrot.slane %v993_v18, 4  ;;  %v1011_v26 = vadd.f32 %v1009_v19, %v1007_v17 }
 0x17d   : > { %v1001_v40 = vrot.slane %v1000_v22, 4  ;;  %v1018_v41 = vadd.f32 %v1010_v23, %v1008_v20 }
 0x17e   : > { %v995_v5 = vadd.f32 %v994_v25, %v993_v18  ;;  %v1012_v29 = vrot.slane %v1011_v26, 4 }
 0x17f   : > { %v1002_v43 = vadd.f32 %v1001_v40, %v1000_v22  ;;  %v1019_v30 = vrot.slane %v1018_v41, 4 }
 0x180   : > { %v996_v31 = vrot.slane %v995_v5, 2  ;;  %v1013_v38 = vadd.f32 %v1012_v29, %v1011_v26 }
 0x181   : > { %v1003_v32 = vrot.slane %v1002_v43, 2  ;;  %v1020_v39 = vadd.f32 %v1019_v30, %v1018_v41 }
 0x182   : > { %v997_v35 = vadd.f32 %v996_v31, %v995_v5  ;;  %v1014_v36 = vrot.slane %v1013_v38, 2 }
 0x183   : > { %v1004_v37 = vadd.f32 %v1003_v32, %v1002_v43  ;;  %v1021_v42 = vrot.slane %v1020_v39, 2 }
 0x184   : > { %v998_v44 = vrot.slane %v997_v35, 1  ;;  %v1015_v45 = vadd.f32 %v1014_v36, %v1013_v38 }
 0x185   : > { %v1005_v46 = vrot.slane %v1004_v37, 1  ;;  %v1022_v47 = vadd.f32 %v1021_v42, %v1020_v39 }
 0x186   : > { %v1016_v49 = vrot.slane %v1015_v45, 1  ;;  %v999_v52 = vadd.f32 %v998_v44, %v997_v35 }
 0x187   : > { %v1023_v50 = vrot.slane %v1022_v47, 1  ;;  %v1006_v54 = vadd.f32 %v1005_v46, %v1004_v37 }
 0x188   : > { %v1017_v53 = vadd.f32 %v1016_v49, %v1015_v45 }
 0x189   : > { %v1024_v55 = vadd.f32 %v1023_v50, %v1022_v47 }
 0x18a   : > { %v1027_v57 = vsel %vm1026_vm3, %v999_v52, %v1017_v53 }
 0x18b   : > { %v1028_v58 = vsel %vm1026_vm3, %v1006_v54, %v1024_v55 }
 0x18c   : > { %v1031_v59 = vcombine.low %v1027_v57, %v1028_v58 }
 0x18e   : > { %v1038_v51 = vrot.slane %v1031_v59, %v1037_v56 }
 0x190   : > { %v1040_v60 = vadd.f32 %v1038_v51, %v1025_v27 }
 0x192   : > { %1041 = vst [vmem:[%s2275_s4] sm:$0xf] %v1040_v60 }
 0x193 PF: > { %s15_s15 = sadd.s32 1, %s1508_s15  }
 0x194   : > { %p12_p6 = scmp.ge.s32.totalorder %s15_s15, 6  }
 0x196   :  { %14 = sbr.rel (!%p12_p6) target bundleno = 1 (0x1), region = 76 }

</bundles_post_ra>
